<compile_context>
chip_gen: v6e
topology: v6e:2x2x1
jax: 0.10.0
libtpu: 0.0.40
codegen_flags: <defaults>
</compile_context>

<pallas_src>
import jax
import jax.numpy as jnp
from jax import lax
from jax.experimental import pallas as pl
from jax.experimental.pallas import tpu as pltpu


# ---------------------------------------------------------------------------
# Fused kernel: all layers + ReLU + FF head, fully VMEM-resident.
# ---------------------------------------------------------------------------
def _fused_span_lstm_kernel(x_ref, wih_ref, whh_ref, b_ref, ffw_ref, ffb_ref,
                            out_ref, gx_scr, act_scr, h_scr, c_scr):
    """Refs:
      x_ref   : (S*Bp, D)   time-major, batch padded to Bp (multiple of 8)
      wih_ref : (L, D, 4H)  input->gate weights (pre-transposed)
      whh_ref : (L, H, 4H)  hidden->gate weights (pre-transposed)
      b_ref   : (L, 1, 4H)  combined bias (b_ih + b_hh)
      ffw_ref : (H, Opad)   FF head weight, lane-padded to 128
      ffb_ref : (1, Opad)
      out_ref : (S*Bp, Opad)
      gx_scr  : (S*Bp, 4H)  hoisted input projection (current layer)
      act_scr : (S*Bp, H)   current layer outputs / next layer inputs
      h_scr   : (Bp, H)     recurrent hidden state
      c_scr   : (Bp, H)     recurrent cell state
    """
    num_layers = wih_ref.shape[0]
    Bp, H = h_scr.shape
    S = gx_scr.shape[0] // Bp

    for layer in range(num_layers):  # static Python loop -> unrolled at trace time
        inp = x_ref[...] if layer == 0 else act_scr[...]

        # Hoisted input projection: one big matmul per layer (M = S*Bp, not B).
        gx_scr[...] = (
            jnp.dot(inp, wih_ref[layer], preferred_element_type=jnp.float32)
            + b_ref[layer]
        )

        h_scr[...] = jnp.zeros_like(h_scr)
        c_scr[...] = jnp.zeros_like(c_scr)
        whh_l = whh_ref[layer]  # hoist loop-invariant weight load

        def step(t, carry):
            start = pl.multiple_of(t * Bp, Bp)
            gates = gx_scr[pl.ds(start, Bp), :] + jnp.dot(
                h_scr[...], whh_l, preferred_element_type=jnp.float32
            )  # (Bp, 4H)
            # Full-width EUP activations, then static slices. Gate order [i,f,g,o].
            sig = jax.nn.sigmoid(gates)
            tnh = jnp.tanh(gates)
            i_g = sig[:, 0 * H:1 * H]
            f_g = sig[:, 1 * H:2 * H]
            g_g = tnh[:, 2 * H:3 * H]
            o_g = sig[:, 3 * H:4 * H]
            c_new = f_g * c_scr[...] + i_g * g_g
            h_new = o_g * jnp.tanh(c_new)
            c_scr[...] = c_new
            h_scr[...] = h_new
            act_scr[pl.ds(start, Bp), :] = h_new
            return carry

        lax.fori_loop(0, S, step, 0, unroll=True)
        # nn.Dropout between stacked layers is identity in eval mode.

    # Fused ReLU + FF head; single lane-dense store of the whole output slab.
    act = jnp.maximum(act_scr[...], 0.0)
    out_ref[...] = (
        jnp.dot(act, ffw_ref[...], preferred_element_type=jnp.float32)
        + ffb_ref[...]
    )


def _round_up(x, m):
    return ((x + m - 1) // m) * m


@jax.jit
def span_detection_lstm(x, params):
    """x: (S, B, D) float32, time-major (PyTorch nn.LSTM default). -> (S, B, O)."""
    S, B, D = x.shape
    wih = params["wih"]      # (L, D, 4H)
    whh = params["whh"]      # (L, H, 4H)
    bias = params["bias"]    # (L, 1, 4H)
    ffw = params["ff_w_t"]   # (H, O)
    ffb = params["ff_b"]     # (1, O)
    four_h = wih.shape[-1]
    H = four_h // 4
    O = ffw.shape[1]

    Bp = _round_up(B, 8)      # sublane-align the batch
    Opad = _round_up(O, 128)  # lane-dense output slab

    # Layout plumbing (padding / flattening) stays in the JAX wrapper.
    x_p = jnp.pad(x, ((0, 0), (0, Bp - B), (0, 0))).reshape(S * Bp, D)
    ffw_p = jnp.pad(ffw, ((0, 0), (0, Opad - O)))
    ffb_p = jnp.pad(ffb, ((0, 0), (0, Opad - O)))

    vmem_spec = pl.BlockSpec(memory_space=pltpu.MemorySpace.VMEM)
    out = pl.pallas_call(
        _fused_span_lstm_kernel,
        out_shape=jax.ShapeDtypeStruct((S * Bp, Opad), jnp.float32),
        in_specs=[vmem_spec] * 6,
        out_specs=vmem_spec,
        scratch_shapes=[
            pltpu.VMEM((S * Bp, four_h), jnp.float32),  # gx_scr
            pltpu.VMEM((S * Bp, H), jnp.float32),       # act_scr
            pltpu.VMEM((Bp, H), jnp.float32),           # h_scr
            pltpu.VMEM((Bp, H), jnp.float32),           # c_scr
        ],
    )(x_p, wih, whh, bias, ffw_p, ffb_p)

    return out.reshape(S, Bp, Opad)[:, :B, :O]


# ---------------------------------------------------------------------------
# Parameter construction (deterministic, PyTorch-style uniform init),
# stacked across layers (in_dim == hidden_dim for every layer in this module).
# ---------------------------------------------------------------------------
def init_params(key, input_dim, output_dim, num_layers):
    hidden_dim = input_dim
    bound = 1.0 / (hidden_dim ** 0.5)
    wih_list, whh_list, b_list = [], [], []
    for _ in range(num_layers):
        key, k1, k2, k3, k4 = jax.random.split(key, 5)
        w_ih = jax.random.uniform(k1, (4 * hidden_dim, hidden_dim), jnp.float32, -bound, bound)
        w_hh = jax.random.uniform(k2, (4 * hidden_dim, hidden_dim), jnp.float32, -bound, bound)
        b_ih = jax.random.uniform(k3, (4 * hidden_dim,), jnp.float32, -bound, bound)
        b_hh = jax.random.uniform(k4, (4 * hidden_dim,), jnp.float32, -bound, bound)
        wih_list.append(w_ih.T)                                    # (D, 4H)
        whh_list.append(w_hh.T)                                    # (H, 4H)
        b_list.append((b_ih + b_hh).reshape(1, 4 * hidden_dim))    # (1, 4H)
    key, k5, k6 = jax.random.split(key, 3)
    w_ff = jax.random.uniform(k5, (output_dim, hidden_dim), jnp.float32, -bound, bound)
    b_ff = jax.random.uniform(k6, (output_dim,), jnp.float32, -bound, bound)
    return {
        "wih": jnp.stack(wih_list),
        "whh": jnp.stack(whh_list),
        "bias": jnp.stack(b_list),
        "ff_w_t": w_ff.T,                       # (H, O)
        "ff_b": b_ff.reshape(1, output_dim),    # (1, O)
    }


# ---------------------------------------------------------------------------
# Pure-JAX reference (for correctness check only).
# ---------------------------------------------------------------------------
def _reference_forward(x, params):
    S, B, D = x.shape
    H = D
    out = x
    for l in range(params["wih"].shape[0]):
        wih, whh, b = params["wih"][l], params["whh"][l], params["bias"][l]
        h = jnp.zeros((B, H), jnp.float32)
        c = jnp.zeros((B, H), jnp.float32)
        ys = []
        for t in range(S):
            g = out[t] @ wih + h @ whh + b
            i_g = jax.nn.sigmoid(g[:, :H])
            f_g = jax.nn.sigmoid(g[:, H:2 * H])
            g_g = jnp.tanh(g[:, 2 * H:3 * H])
            o_g = jax.nn.sigmoid(g[:, 3 * H:])
            c = f_g * c + i_g * g_g
            h = o_g * jnp.tanh(c)
            ys.append(h)
        out = jnp.stack(ys)
    out = jnp.maximum(out, 0.0)
    return out @ params["ff_w_t"] + params["ff_b"]


if __name__ == "__main__":
    SEQ, BATCH, INPUT_DIM, OUTPUT_DIM, NUM_LAYERS = 8, 2, 32, 8, 2

    key = jax.random.PRNGKey(0)
    key, xkey = jax.random.split(key)
    x = jax.random.normal(xkey, (SEQ, BATCH, INPUT_DIM), jnp.float32)

    params = init_params(key, INPUT_DIM, OUTPUT_DIM, NUM_LAYERS)

    out = span_detection_lstm(x, params)
    out = jax.block_until_ready(out)
    assert out.shape == (SEQ, BATCH, OUTPUT_DIM), out.shape

    ref = _reference_forward(x, params)
    assert jnp.all(jnp.isfinite(out))
    assert jnp.allclose(out, ref, atol=5e-3, rtol=5e-3), float(jnp.max(jnp.abs(out - ref)))

    print("KERNEL_OK")
</pallas_src>

<mosaic_0001>
module attributes {stable_mosaic.version = 11 : i64} {
  func.func @_fused_span_lstm_kernel(%arg0: memref<64x32xf32, #tpu.memory_space<vmem>>, %arg1: memref<2x32x128xf32, #tpu.memory_space<vmem>>, %arg2: memref<2x32x128xf32, #tpu.memory_space<vmem>>, %arg3: memref<2x1x128xf32, #tpu.memory_space<vmem>>, %arg4: memref<32x128xf32, #tpu.memory_space<vmem>>, %arg5: memref<1x128xf32, #tpu.memory_space<vmem>>, %arg6: memref<64x128xf32, #tpu.memory_space<vmem>>, %arg7: memref<64x128xf32, #tpu.memory_space<vmem>>, %arg8: memref<64x32xf32, #tpu.memory_space<vmem>>, %arg9: memref<8x32xf32, #tpu.memory_space<vmem>>, %arg10: memref<8x32xf32, #tpu.memory_space<vmem>>) attributes {dimension_semantics = [], scalar_prefetch = 0 : i64, scratch_operands = 4 : i64, tpu.core_type = #tpu.core_type<tc>} {
    %c0 = arith.constant 0 : index
    %c0_0 = arith.constant 0 : index
    %0 = vector.load %arg0[%c0, %c0_0] : memref<64x32xf32, #tpu.memory_space<vmem>>, vector<64x32xf32>
    %c0_1 = arith.constant 0 : index
    %c0_2 = arith.constant 0 : index
    %c0_3 = arith.constant 0 : index
    %1 = vector.load %arg1[%c0_1, %c0_2, %c0_3] : memref<2x32x128xf32, #tpu.memory_space<vmem>>, vector<1x32x128xf32>
    %2 = vector.shape_cast %1 : vector<1x32x128xf32> to vector<32x128xf32>
    %cst = arith.constant dense<0.000000e+00> : vector<64x128xf32>
    %3 = tpu.matmul %0, %2, %cst {dimension_numbers = #tpu.dot_dimension_numbers<[1], [0], [0], [1], [0, 0, 1, 1], [], []>} : vector<64x32xf32>, vector<32x128xf32>, vector<64x128xf32> -> vector<64x128xf32>
    %c0_4 = arith.constant 0 : index
    %c0_5 = arith.constant 0 : index
    %c0_6 = arith.constant 0 : index
    %4 = vector.load %arg3[%c0_4, %c0_5, %c0_6] : memref<2x1x128xf32, #tpu.memory_space<vmem>>, vector<1x1x128xf32>
    %5 = vector.shape_cast %4 : vector<1x1x128xf32> to vector<1x128xf32>
    %6 = vector.broadcast %5 : vector<1x128xf32> to vector<64x128xf32>
    %7 = arith.addf %3, %6 : vector<64x128xf32>
    %c0_7 = arith.constant 0 : index
    %c0_8 = arith.constant 0 : index
    %8 = vector.load %arg7[%c0_7, %c0_8] : memref<64x128xf32, #tpu.memory_space<vmem>>, vector<64x128xf32>
    tpu.vector_store %arg7[%c0_7, %c0_8], %7 {strides = array<i32>} : memref<64x128xf32, #tpu.memory_space<vmem>>, vector<64x128xf32>,
    %cst_9 = arith.constant 0.000000e+00 : f32
    %9 = vector.broadcast %cst_9 : f32 to vector<8x32xf32>
    %c0_10 = arith.constant 0 : index
    %c0_11 = arith.constant 0 : index
    %10 = vector.load %arg9[%c0_10, %c0_11] : memref<8x32xf32, #tpu.memory_space<vmem>>, vector<8x32xf32>
    tpu.vector_store %arg9[%c0_10, %c0_11], %9 {strides = array<i32>} : memref<8x32xf32, #tpu.memory_space<vmem>>, vector<8x32xf32>,
    %cst_12 = arith.constant 0.000000e+00 : f32
    %11 = vector.broadcast %cst_12 : f32 to vector<8x32xf32>
    %c0_13 = arith.constant 0 : index
    %c0_14 = arith.constant 0 : index
    %12 = vector.load %arg10[%c0_13, %c0_14] : memref<8x32xf32, #tpu.memory_space<vmem>>, vector<8x32xf32>
    tpu.vector_store %arg10[%c0_13, %c0_14], %11 {strides = array<i32>} : memref<8x32xf32, #tpu.memory_space<vmem>>, vector<8x32xf32>,
    %c0_15 = arith.constant 0 : index
    %c0_16 = arith.constant 0 : index
    %c0_17 = arith.constant 0 : index
    %13 = vector.load %arg2[%c0_15, %c0_16, %c0_17] : memref<2x32x128xf32, #tpu.memory_space<vmem>>, vector<1x32x128xf32>
    %14 = vector.shape_cast %13 : vector<1x32x128xf32> to vector<32x128xf32>
    %c0_i32 = arith.constant 0 : i32
    %c8_i32 = arith.constant 8 : i32
    %15 = arith.muli %c0_i32, %c8_i32 : i32
    %16 = tpu.assume_multiple %15, 8 : i32
    %17 = arith.index_cast %16 : i32 to index
    %c0_18 = arith.constant 0 : index
    %18 = vector.load %arg7[%17, %c0_18] : memref<64x128xf32, #tpu.memory_space<vmem>>, vector<8x128xf32>
    %c0_19 = arith.constant 0 : index
    %c0_20 = arith.constant 0 : index
    %19 = vector.load %arg9[%c0_19, %c0_20] : memref<8x32xf32, #tpu.memory_space<vmem>>, vector<8x32xf32>
    %cst_21 = arith.constant dense<0.000000e+00> : vector<8x128xf32>
    %20 = tpu.matmul %19, %14, %cst_21 {dimension_numbers = #tpu.dot_dimension_numbers<[1], [0], [0], [1], [0, 0, 1, 1], [], []>} : vector<8x32xf32>, vector<32x128xf32>, vector<8x128xf32> -> vector<8x128xf32>
    %21 = arith.addf %18, %20 : vector<8x128xf32>
    %22 = arith.negf %21 : vector<8x128xf32>
    %23 = math.exp %22 : vector<8x128xf32>
    %cst_22 = arith.constant 1.000000e+00 : f32
    %24 = vector.broadcast %cst_22 : f32 to vector<8x128xf32>
    %25 = arith.addf %24, %23 : vector<8x128xf32>
    %26 = arith.divf %24, %25 : vector<8x128xf32>
    %27 = math.tanh %21 : vector<8x128xf32>
    %28 = vector.extract_strided_slice %26 {offsets = [0, 0], sizes = [8, 32], strides = [1, 1]} : vector<8x128xf32> to vector<8x32xf32>
    %29 = vector.extract_strided_slice %26 {offsets = [0, 32], sizes = [8, 32], strides = [1, 1]} : vector<8x128xf32> to vector<8x32xf32>
    %30 = vector.extract_strided_slice %27 {offsets = [0, 64], sizes = [8, 32], strides = [1, 1]} : vector<8x128xf32> to vector<8x32xf32>
    %31 = vector.extract_strided_slice %26 {offsets = [0, 96], sizes = [8, 32], strides = [1, 1]} : vector<8x128xf32> to vector<8x32xf32>
    %c0_23 = arith.constant 0 : index
    %c0_24 = arith.constant 0 : index
    %32 = vector.load %arg10[%c0_23, %c0_24] : memref<8x32xf32, #tpu.memory_space<vmem>>, vector<8x32xf32>
    %33 = arith.mulf %29, %32 : vector<8x32xf32>
    %34 = arith.mulf %28, %30 : vector<8x32xf32>
    %35 = arith.addf %33, %34 : vector<8x32xf32>
    %36 = math.tanh %35 : vector<8x32xf32>
    %37 = arith.mulf %31, %36 : vector<8x32xf32>
    %c0_25 = arith.constant 0 : index
    %c0_26 = arith.constant 0 : index
    %38 = vector.load %arg10[%c0_25, %c0_26] : memref<8x32xf32, #tpu.memory_space<vmem>>, vector<8x32xf32>
    tpu.vector_store %arg10[%c0_25, %c0_26], %35 {strides = array<i32>} : memref<8x32xf32, #tpu.memory_space<vmem>>, vector<8x32xf32>,
    %c0_27 = arith.constant 0 : index
    %c0_28 = arith.constant 0 : index
    %39 = vector.load %arg9[%c0_27, %c0_28] : memref<8x32xf32, #tpu.memory_space<vmem>>, vector<8x32xf32>
    tpu.vector_store %arg9[%c0_27, %c0_28], %37 {strides = array<i32>} : memref<8x32xf32, #tpu.memory_space<vmem>>, vector<8x32xf32>,
    %40 = arith.index_cast %16 : i32 to index
    %c0_29 = arith.constant 0 : index
    %41 = vector.load %arg8[%40, %c0_29] : memref<64x32xf32, #tpu.memory_space<vmem>>, vector<8x32xf32>
    tpu.vector_store %arg8[%40, %c0_29], %37 {strides = array<i32>} : memref<64x32xf32, #tpu.memory_space<vmem>>, vector<8x32xf32>,
    %c1_i32 = arith.constant 1 : i32
    %c8_i32_30 = arith.constant 8 : i32
    %42 = arith.muli %c1_i32, %c8_i32_30 : i32
    %43 = tpu.assume_multiple %42, 8 : i32
    %44 = arith.index_cast %43 : i32 to index
    %c0_31 = arith.constant 0 : index
    %45 = vector.load %arg7[%44, %c0_31] : memref<64x128xf32, #tpu.memory_space<vmem>>, vector<8x128xf32>
    %c0_32 = arith.constant 0 : index
    %c0_33 = arith.constant 0 : index
    %46 = vector.load %arg9[%c0_32, %c0_33] : memref<8x32xf32, #tpu.memory_space<vmem>>, vector<8x32xf32>
    %cst_34 = arith.constant dense<0.000000e+00> : vector<8x128xf32>
    %47 = tpu.matmul %46, %14, %cst_34 {dimension_numbers = #tpu.dot_dimension_numbers<[1], [0], [0], [1], [0, 0, 1, 1], [], []>} : vector<8x32xf32>, vector<32x128xf32>, vector<8x128xf32> -> vector<8x128xf32>
    %48 = arith.addf %45, %47 : vector<8x128xf32>
    %49 = arith.negf %48 : vector<8x128xf32>
    %50 = math.exp %49 : vector<8x128xf32>
    %cst_35 = arith.constant 1.000000e+00 : f32
    %51 = vector.broadcast %cst_35 : f32 to vector<8x128xf32>
    %52 = arith.addf %51, %50 : vector<8x128xf32>
    %53 = arith.divf %51, %52 : vector<8x128xf32>
    %54 = math.tanh %48 : vector<8x128xf32>
    %55 = vector.extract_strided_slice %53 {offsets = [0, 0], sizes = [8, 32], strides = [1, 1]} : vector<8x128xf32> to vector<8x32xf32>
    %56 = vector.extract_strided_slice %53 {offsets = [0, 32], sizes = [8, 32], strides = [1, 1]} : vector<8x128xf32> to vector<8x32xf32>
    %57 = vector.extract_strided_slice %54 {offsets = [0, 64], sizes = [8, 32], strides = [1, 1]} : vector<8x128xf32> to vector<8x32xf32>
    %58 = vector.extract_strided_slice %53 {offsets = [0, 96], sizes = [8, 32], strides = [1, 1]} : vector<8x128xf32> to vector<8x32xf32>
    %c0_36 = arith.constant 0 : index
    %c0_37 = arith.constant 0 : index
    %59 = vector.load %arg10[%c0_36, %c0_37] : memref<8x32xf32, #tpu.memory_space<vmem>>, vector<8x32xf32>
    %60 = arith.mulf %56, %59 : vector<8x32xf32>
    %61 = arith.mulf %55, %57 : vector<8x32xf32>
    %62 = arith.addf %60, %61 : vector<8x32xf32>
    %63 = math.tanh %62 : vector<8x32xf32>
    %64 = arith.mulf %58, %63 : vector<8x32xf32>
    %c0_38 = arith.constant 0 : index
    %c0_39 = arith.constant 0 : index
    %65 = vector.load %arg10[%c0_38, %c0_39] : memref<8x32xf32, #tpu.memory_space<vmem>>, vector<8x32xf32>
    tpu.vector_store %arg10[%c0_38, %c0_39], %62 {strides = array<i32>} : memref<8x32xf32, #tpu.memory_space<vmem>>, vector<8x32xf32>,
    %c0_40 = arith.constant 0 : index
    %c0_41 = arith.constant 0 : index
    %66 = vector.load %arg9[%c0_40, %c0_41] : memref<8x32xf32, #tpu.memory_space<vmem>>, vector<8x32xf32>
    tpu.vector_store %arg9[%c0_40, %c0_41], %64 {strides = array<i32>} : memref<8x32xf32, #tpu.memory_space<vmem>>, vector<8x32xf32>,
    %67 = arith.index_cast %43 : i32 to index
    %c0_42 = arith.constant 0 : index
    %68 = vector.load %arg8[%67, %c0_42] : memref<64x32xf32, #tpu.memory_space<vmem>>, vector<8x32xf32>
    tpu.vector_store %arg8[%67, %c0_42], %64 {strides = array<i32>} : memref<64x32xf32, #tpu.memory_space<vmem>>, vector<8x32xf32>,
    %c2_i32 = arith.constant 2 : i32
    %c8_i32_43 = arith.constant 8 : i32
    %69 = arith.muli %c2_i32, %c8_i32_43 : i32
    %70 = tpu.assume_multiple %69, 8 : i32
    %71 = arith.index_cast %70 : i32 to index
    %c0_44 = arith.constant 0 : index
    %72 = vector.load %arg7[%71, %c0_44] : memref<64x128xf32, #tpu.memory_space<vmem>>, vector<8x128xf32>
    %c0_45 = arith.constant 0 : index
    %c0_46 = arith.constant 0 : index
    %73 = vector.load %arg9[%c0_45, %c0_46] : memref<8x32xf32, #tpu.memory_space<vmem>>, vector<8x32xf32>
    %cst_47 = arith.constant dense<0.000000e+00> : vector<8x128xf32>
    %74 = tpu.matmul %73, %14, %cst_47 {dimension_numbers = #tpu.dot_dimension_numbers<[1], [0], [0], [1], [0, 0, 1, 1], [], []>} : vector<8x32xf32>, vector<32x128xf32>, vector<8x128xf32> -> vector<8x128xf32>
    %75 = arith.addf %72, %74 : vector<8x128xf32>
    %76 = arith.negf %75 : vector<8x128xf32>
    %77 = math.exp %76 : vector<8x128xf32>
    %cst_48 = arith.constant 1.000000e+00 : f32
    %78 = vector.broadcast %cst_48 : f32 to vector<8x128xf32>
    %79 = arith.addf %78, %77 : vector<8x128xf32>
    %80 = arith.divf %78, %79 : vector<8x128xf32>
    %81 = math.tanh %75 : vector<8x128xf32>
    %82 = vector.extract_strided_slice %80 {offsets = [0, 0], sizes = [8, 32], strides = [1, 1]} : vector<8x128xf32> to vector<8x32xf32>
    %83 = vector.extract_strided_slice %80 {offsets = [0, 32], sizes = [8, 32], strides = [1, 1]} : vector<8x128xf32> to vector<8x32xf32>
    %84 = vector.extract_strided_slice %81 {offsets = [0, 64], sizes = [8, 32], strides = [1, 1]} : vector<8x128xf32> to vector<8x32xf32>
    %85 = vector.extract_strided_slice %80 {offsets = [0, 96], sizes = [8, 32], strides = [1, 1]} : vector<8x128xf32> to vector<8x32xf32>
    %c0_49 = arith.constant 0 : index
    %c0_50 = arith.constant 0 : index
    %86 = vector.load %arg10[%c0_49, %c0_50] : memref<8x32xf32, #tpu.memory_space<vmem>>, vector<8x32xf32>
    %87 = arith.mulf %83, %86 : vector<8x32xf32>
    %88 = arith.mulf %82, %84 : vector<8x32xf32>
    %89 = arith.addf %87, %88 : vector<8x32xf32>
    %90 = math.tanh %89 : vector<8x32xf32>
    %91 = arith.mulf %85, %90 : vector<8x32xf32>
    %c0_51 = arith.constant 0 : index
    %c0_52 = arith.constant 0 : index
    %92 = vector.load %arg10[%c0_51, %c0_52] : memref<8x32xf32, #tpu.memory_space<vmem>>, vector<8x32xf32>
    tpu.vector_store %arg10[%c0_51, %c0_52], %89 {strides = array<i32>} : memref<8x32xf32, #tpu.memory_space<vmem>>, vector<8x32xf32>,
    %c0_53 = arith.constant 0 : index
    %c0_54 = arith.constant 0 : index
    %93 = vector.load %arg9[%c0_53, %c0_54] : memref<8x32xf32, #tpu.memory_space<vmem>>, vector<8x32xf32>
    tpu.vector_store %arg9[%c0_53, %c0_54], %91 {strides = array<i32>} : memref<8x32xf32, #tpu.memory_space<vmem>>, vector<8x32xf32>,
    %94 = arith.index_cast %70 : i32 to index
    %c0_55 = arith.constant 0 : index
    %95 = vector.load %arg8[%94, %c0_55] : memref<64x32xf32, #tpu.memory_space<vmem>>, vector<8x32xf32>
    tpu.vector_store %arg8[%94, %c0_55], %91 {strides = array<i32>} : memref<64x32xf32, #tpu.memory_space<vmem>>, vector<8x32xf32>,
    %c3_i32 = arith.constant 3 : i32
    %c8_i32_56 = arith.constant 8 : i32
    %96 = arith.muli %c3_i32, %c8_i32_56 : i32
    %97 = tpu.assume_multiple %96, 8 : i32
    %98 = arith.index_cast %97 : i32 to index
    %c0_57 = arith.constant 0 : index
    %99 = vector.load %arg7[%98, %c0_57] : memref<64x128xf32, #tpu.memory_space<vmem>>, vector<8x128xf32>
    %c0_58 = arith.constant 0 : index
    %c0_59 = arith.constant 0 : index
    %100 = vector.load %arg9[%c0_58, %c0_59] : memref<8x32xf32, #tpu.memory_space<vmem>>, vector<8x32xf32>
    %cst_60 = arith.constant dense<0.000000e+00> : vector<8x128xf32>
    %101 = tpu.matmul %100, %14, %cst_60 {dimension_numbers = #tpu.dot_dimension_numbers<[1], [0], [0], [1], [0, 0, 1, 1], [], []>} : vector<8x32xf32>, vector<32x128xf32>, vector<8x128xf32> -> vector<8x128xf32>
    %102 = arith.addf %99, %101 : vector<8x128xf32>
    %103 = arith.negf %102 : vector<8x128xf32>
    %104 = math.exp %103 : vector<8x128xf32>
    %cst_61 = arith.constant 1.000000e+00 : f32
    %105 = vector.broadcast %cst_61 : f32 to vector<8x128xf32>
    %106 = arith.addf %105, %104 : vector<8x128xf32>
    %107 = arith.divf %105, %106 : vector<8x128xf32>
    %108 = math.tanh %102 : vector<8x128xf32>
    %109 = vector.extract_strided_slice %107 {offsets = [0, 0], sizes = [8, 32], strides = [1, 1]} : vector<8x128xf32> to vector<8x32xf32>
    %110 = vector.extract_strided_slice %107 {offsets = [0, 32], sizes = [8, 32], strides = [1, 1]} : vector<8x128xf32> to vector<8x32xf32>
    %111 = vector.extract_strided_slice %108 {offsets = [0, 64], sizes = [8, 32], strides = [1, 1]} : vector<8x128xf32> to vector<8x32xf32>
    %112 = vector.extract_strided_slice %107 {offsets = [0, 96], sizes = [8, 32], strides = [1, 1]} : vector<8x128xf32> to vector<8x32xf32>
    %c0_62 = arith.constant 0 : index
    %c0_63 = arith.constant 0 : index
    %113 = vector.load %arg10[%c0_62, %c0_63] : memref<8x32xf32, #tpu.memory_space<vmem>>, vector<8x32xf32>
    %114 = arith.mulf %110, %113 : vector<8x32xf32>
    %115 = arith.mulf %109, %111 : vector<8x32xf32>
    %116 = arith.addf %114, %115 : vector<8x32xf32>
    %117 = math.tanh %116 : vector<8x32xf32>
    %118 = arith.mulf %112, %117 : vector<8x32xf32>
    %c0_64 = arith.constant 0 : index
    %c0_65 = arith.constant 0 : index
    %119 = vector.load %arg10[%c0_64, %c0_65] : memref<8x32xf32, #tpu.memory_space<vmem>>, vector<8x32xf32>
    tpu.vector_store %arg10[%c0_64, %c0_65], %116 {strides = array<i32>} : memref<8x32xf32, #tpu.memory_space<vmem>>, vector<8x32xf32>,
    %c0_66 = arith.constant 0 : index
    %c0_67 = arith.constant 0 : index
    %120 = vector.load %arg9[%c0_66, %c0_67] : memref<8x32xf32, #tpu.memory_space<vmem>>, vector<8x32xf32>
    tpu.vector_store %arg9[%c0_66, %c0_67], %118 {strides = array<i32>} : memref<8x32xf32, #tpu.memory_space<vmem>>, vector<8x32xf32>,
    %121 = arith.index_cast %97 : i32 to index
    %c0_68 = arith.constant 0 : index
    %122 = vector.load %arg8[%121, %c0_68] : memref<64x32xf32, #tpu.memory_space<vmem>>, vector<8x32xf32>
    tpu.vector_store %arg8[%121, %c0_68], %118 {strides = array<i32>} : memref<64x32xf32, #tpu.memory_space<vmem>>, vector<8x32xf32>,
    %c4_i32 = arith.constant 4 : i32
    %c8_i32_69 = arith.constant 8 : i32
    %123 = arith.muli %c4_i32, %c8_i32_69 : i32
    %124 = tpu.assume_multiple %123, 8 : i32
    %125 = arith.index_cast %124 : i32 to index
    %c0_70 = arith.constant 0 : index
    %126 = vector.load %arg7[%125, %c0_70] : memref<64x128xf32, #tpu.memory_space<vmem>>, vector<8x128xf32>
    %c0_71 = arith.constant 0 : index
    %c0_72 = arith.constant 0 : index
    %127 = vector.load %arg9[%c0_71, %c0_72] : memref<8x32xf32, #tpu.memory_space<vmem>>, vector<8x32xf32>
    %cst_73 = arith.constant dense<0.000000e+00> : vector<8x128xf32>
    %128 = tpu.matmul %127, %14, %cst_73 {dimension_numbers = #tpu.dot_dimension_numbers<[1], [0], [0], [1], [0, 0, 1, 1], [], []>} : vector<8x32xf32>, vector<32x128xf32>, vector<8x128xf32> -> vector<8x128xf32>
    %129 = arith.addf %126, %128 : vector<8x128xf32>
    %130 = arith.negf %129 : vector<8x128xf32>
    %131 = math.exp %130 : vector<8x128xf32>
    %cst_74 = arith.constant 1.000000e+00 : f32
    %132 = vector.broadcast %cst_74 : f32 to vector<8x128xf32>
    %133 = arith.addf %132, %131 : vector<8x128xf32>
    %134 = arith.divf %132, %133 : vector<8x128xf32>
    %135 = math.tanh %129 : vector<8x128xf32>
    %136 = vector.extract_strided_slice %134 {offsets = [0, 0], sizes = [8, 32], strides = [1, 1]} : vector<8x128xf32> to vector<8x32xf32>
    %137 = vector.extract_strided_slice %134 {offsets = [0, 32], sizes = [8, 32], strides = [1, 1]} : vector<8x128xf32> to vector<8x32xf32>
    %138 = vector.extract_strided_slice %135 {offsets = [0, 64], sizes = [8, 32], strides = [1, 1]} : vector<8x128xf32> to vector<8x32xf32>
    %139 = vector.extract_strided_slice %134 {offsets = [0, 96], sizes = [8, 32], strides = [1, 1]} : vector<8x128xf32> to vector<8x32xf32>
    %c0_75 = arith.constant 0 : index
    %c0_76 = arith.constant 0 : index
    %140 = vector.load %arg10[%c0_75, %c0_76] : memref<8x32xf32, #tpu.memory_space<vmem>>, vector<8x32xf32>
    %141 = arith.mulf %137, %140 : vector<8x32xf32>
    %142 = arith.mulf %136, %138 : vector<8x32xf32>
    %143 = arith.addf %141, %142 : vector<8x32xf32>
    %144 = math.tanh %143 : vector<8x32xf32>
    %145 = arith.mulf %139, %144 : vector<8x32xf32>
    %c0_77 = arith.constant 0 : index
    %c0_78 = arith.constant 0 : index
    %146 = vector.load %arg10[%c0_77, %c0_78] : memref<8x32xf32, #tpu.memory_space<vmem>>, vector<8x32xf32>
    tpu.vector_store %arg10[%c0_77, %c0_78], %143 {strides = array<i32>} : memref<8x32xf32, #tpu.memory_space<vmem>>, vector<8x32xf32>,
    %c0_79 = arith.constant 0 : index
    %c0_80 = arith.constant 0 : index
    %147 = vector.load %arg9[%c0_79, %c0_80] : memref<8x32xf32, #tpu.memory_space<vmem>>, vector<8x32xf32>
    tpu.vector_store %arg9[%c0_79, %c0_80], %145 {strides = array<i32>} : memref<8x32xf32, #tpu.memory_space<vmem>>, vector<8x32xf32>,
    %148 = arith.index_cast %124 : i32 to index
    %c0_81 = arith.constant 0 : index
    %149 = vector.load %arg8[%148, %c0_81] : memref<64x32xf32, #tpu.memory_space<vmem>>, vector<8x32xf32>
    tpu.vector_store %arg8[%148, %c0_81], %145 {strides = array<i32>} : memref<64x32xf32, #tpu.memory_space<vmem>>, vector<8x32xf32>,
    %c5_i32 = arith.constant 5 : i32
    %c8_i32_82 = arith.constant 8 : i32
    %150 = arith.muli %c5_i32, %c8_i32_82 : i32
    %151 = tpu.assume_multiple %150, 8 : i32
    %152 = arith.index_cast %151 : i32 to index
    %c0_83 = arith.constant 0 : index
    %153 = vector.load %arg7[%152, %c0_83] : memref<64x128xf32, #tpu.memory_space<vmem>>, vector<8x128xf32>
    %c0_84 = arith.constant 0 : index
    %c0_85 = arith.constant 0 : index
    %154 = vector.load %arg9[%c0_84, %c0_85] : memref<8x32xf32, #tpu.memory_space<vmem>>, vector<8x32xf32>
    %cst_86 = arith.constant dense<0.000000e+00> : vector<8x128xf32>
    %155 = tpu.matmul %154, %14, %cst_86 {dimension_numbers = #tpu.dot_dimension_numbers<[1], [0], [0], [1], [0, 0, 1, 1], [], []>} : vector<8x32xf32>, vector<32x128xf32>, vector<8x128xf32> -> vector<8x128xf32>
    %156 = arith.addf %153, %155 : vector<8x128xf32>
    %157 = arith.negf %156 : vector<8x128xf32>
    %158 = math.exp %157 : vector<8x128xf32>
    %cst_87 = arith.constant 1.000000e+00 : f32
    %159 = vector.broadcast %cst_87 : f32 to vector<8x128xf32>
    %160 = arith.addf %159, %158 : vector<8x128xf32>
    %161 = arith.divf %159, %160 : vector<8x128xf32>
    %162 = math.tanh %156 : vector<8x128xf32>
    %163 = vector.extract_strided_slice %161 {offsets = [0, 0], sizes = [8, 32], strides = [1, 1]} : vector<8x128xf32> to vector<8x32xf32>
    %164 = vector.extract_strided_slice %161 {offsets = [0, 32], sizes = [8, 32], strides = [1, 1]} : vector<8x128xf32> to vector<8x32xf32>
    %165 = vector.extract_strided_slice %162 {offsets = [0, 64], sizes = [8, 32], strides = [1, 1]} : vector<8x128xf32> to vector<8x32xf32>
    %166 = vector.extract_strided_slice %161 {offsets = [0, 96], sizes = [8, 32], strides = [1, 1]} : vector<8x128xf32> to vector<8x32xf32>
    %c0_88 = arith.constant 0 : index
    %c0_89 = arith.constant 0 : index
    %167 = vector.load %arg10[%c0_88, %c0_89] : memref<8x32xf32, #tpu.memory_space<vmem>>, vector<8x32xf32>
    %168 = arith.mulf %164, %167 : vector<8x32xf32>
    %169 = arith.mulf %163, %165 : vector<8x32xf32>
    %170 = arith.addf %168, %169 : vector<8x32xf32>
    %171 = math.tanh %170 : vector<8x32xf32>
    %172 = arith.mulf %166, %171 : vector<8x32xf32>
    %c0_90 = arith.constant 0 : index
    %c0_91 = arith.constant 0 : index
    %173 = vector.load %arg10[%c0_90, %c0_91] : memref<8x32xf32, #tpu.memory_space<vmem>>, vector<8x32xf32>
    tpu.vector_store %arg10[%c0_90, %c0_91], %170 {strides = array<i32>} : memref<8x32xf32, #tpu.memory_space<vmem>>, vector<8x32xf32>,
    %c0_92 = arith.constant 0 : index
    %c0_93 = arith.constant 0 : index
    %174 = vector.load %arg9[%c0_92, %c0_93] : memref<8x32xf32, #tpu.memory_space<vmem>>, vector<8x32xf32>
    tpu.vector_store %arg9[%c0_92, %c0_93], %172 {strides = array<i32>} : memref<8x32xf32, #tpu.memory_space<vmem>>, vector<8x32xf32>,
    %175 = arith.index_cast %151 : i32 to index
    %c0_94 = arith.constant 0 : index
    %176 = vector.load %arg8[%175, %c0_94] : memref<64x32xf32, #tpu.memory_space<vmem>>, vector<8x32xf32>
    tpu.vector_store %arg8[%175, %c0_94], %172 {strides = array<i32>} : memref<64x32xf32, #tpu.memory_space<vmem>>, vector<8x32xf32>,
    %c6_i32 = arith.constant 6 : i32
    %c8_i32_95 = arith.constant 8 : i32
    %177 = arith.muli %c6_i32, %c8_i32_95 : i32
    %178 = tpu.assume_multiple %177, 8 : i32
    %179 = arith.index_cast %178 : i32 to index
    %c0_96 = arith.constant 0 : index
    %180 = vector.load %arg7[%179, %c0_96] : memref<64x128xf32, #tpu.memory_space<vmem>>, vector<8x128xf32>
    %c0_97 = arith.constant 0 : index
    %c0_98 = arith.constant 0 : index
    %181 = vector.load %arg9[%c0_97, %c0_98] : memref<8x32xf32, #tpu.memory_space<vmem>>, vector<8x32xf32>
    %cst_99 = arith.constant dense<0.000000e+00> : vector<8x128xf32>
    %182 = tpu.matmul %181, %14, %cst_99 {dimension_numbers = #tpu.dot_dimension_numbers<[1], [0], [0], [1], [0, 0, 1, 1], [], []>} : vector<8x32xf32>, vector<32x128xf32>, vector<8x128xf32> -> vector<8x128xf32>
    %183 = arith.addf %180, %182 : vector<8x128xf32>
    %184 = arith.negf %183 : vector<8x128xf32>
    %185 = math.exp %184 : vector<8x128xf32>
    %cst_100 = arith.constant 1.000000e+00 : f32
    %186 = vector.broadcast %cst_100 : f32 to vector<8x128xf32>
    %187 = arith.addf %186, %185 : vector<8x128xf32>
    %188 = arith.divf %186, %187 : vector<8x128xf32>
    %189 = math.tanh %183 : vector<8x128xf32>
    %190 = vector.extract_strided_slice %188 {offsets = [0, 0], sizes = [8, 32], strides = [1, 1]} : vector<8x128xf32> to vector<8x32xf32>
    %191 = vector.extract_strided_slice %188 {offsets = [0, 32], sizes = [8, 32], strides = [1, 1]} : vector<8x128xf32> to vector<8x32xf32>
    %192 = vector.extract_strided_slice %189 {offsets = [0, 64], sizes = [8, 32], strides = [1, 1]} : vector<8x128xf32> to vector<8x32xf32>
    %193 = vector.extract_strided_slice %188 {offsets = [0, 96], sizes = [8, 32], strides = [1, 1]} : vector<8x128xf32> to vector<8x32xf32>
    %c0_101 = arith.constant 0 : index
    %c0_102 = arith.constant 0 : index
    %194 = vector.load %arg10[%c0_101, %c0_102] : memref<8x32xf32, #tpu.memory_space<vmem>>, vector<8x32xf32>
    %195 = arith.mulf %191, %194 : vector<8x32xf32>
    %196 = arith.mulf %190, %192 : vector<8x32xf32>
    %197 = arith.addf %195, %196 : vector<8x32xf32>
    %198 = math.tanh %197 : vector<8x32xf32>
    %199 = arith.mulf %193, %198 : vector<8x32xf32>
    %c0_103 = arith.constant 0 : index
    %c0_104 = arith.constant 0 : index
    %200 = vector.load %arg10[%c0_103, %c0_104] : memref<8x32xf32, #tpu.memory_space<vmem>>, vector<8x32xf32>
    tpu.vector_store %arg10[%c0_103, %c0_104], %197 {strides = array<i32>} : memref<8x32xf32, #tpu.memory_space<vmem>>, vector<8x32xf32>,
    %c0_105 = arith.constant 0 : index
    %c0_106 = arith.constant 0 : index
    %201 = vector.load %arg9[%c0_105, %c0_106] : memref<8x32xf32, #tpu.memory_space<vmem>>, vector<8x32xf32>
    tpu.vector_store %arg9[%c0_105, %c0_106], %199 {strides = array<i32>} : memref<8x32xf32, #tpu.memory_space<vmem>>, vector<8x32xf32>,
    %202 = arith.index_cast %178 : i32 to index
    %c0_107 = arith.constant 0 : index
    %203 = vector.load %arg8[%202, %c0_107] : memref<64x32xf32, #tpu.memory_space<vmem>>, vector<8x32xf32>
    tpu.vector_store %arg8[%202, %c0_107], %199 {strides = array<i32>} : memref<64x32xf32, #tpu.memory_space<vmem>>, vector<8x32xf32>,
    %c7_i32 = arith.constant 7 : i32
    %c8_i32_108 = arith.constant 8 : i32
    %204 = arith.muli %c7_i32, %c8_i32_108 : i32
    %205 = tpu.assume_multiple %204, 8 : i32
    %206 = arith.index_cast %205 : i32 to index
    %c0_109 = arith.constant 0 : index
    %207 = vector.load %arg7[%206, %c0_109] : memref<64x128xf32, #tpu.memory_space<vmem>>, vector<8x128xf32>
    %c0_110 = arith.constant 0 : index
    %c0_111 = arith.constant 0 : index
    %208 = vector.load %arg9[%c0_110, %c0_111] : memref<8x32xf32, #tpu.memory_space<vmem>>, vector<8x32xf32>
    %cst_112 = arith.constant dense<0.000000e+00> : vector<8x128xf32>
    %209 = tpu.matmul %208, %14, %cst_112 {dimension_numbers = #tpu.dot_dimension_numbers<[1], [0], [0], [1], [0, 0, 1, 1], [], []>} : vector<8x32xf32>, vector<32x128xf32>, vector<8x128xf32> -> vector<8x128xf32>
    %210 = arith.addf %207, %209 : vector<8x128xf32>
    %211 = arith.negf %210 : vector<8x128xf32>
    %212 = math.exp %211 : vector<8x128xf32>
    %cst_113 = arith.constant 1.000000e+00 : f32
    %213 = vector.broadcast %cst_113 : f32 to vector<8x128xf32>
    %214 = arith.addf %213, %212 : vector<8x128xf32>
    %215 = arith.divf %213, %214 : vector<8x128xf32>
    %216 = math.tanh %210 : vector<8x128xf32>
    %217 = vector.extract_strided_slice %215 {offsets = [0, 0], sizes = [8, 32], strides = [1, 1]} : vector<8x128xf32> to vector<8x32xf32>
    %218 = vector.extract_strided_slice %215 {offsets = [0, 32], sizes = [8, 32], strides = [1, 1]} : vector<8x128xf32> to vector<8x32xf32>
    %219 = vector.extract_strided_slice %216 {offsets = [0, 64], sizes = [8, 32], strides = [1, 1]} : vector<8x128xf32> to vector<8x32xf32>
    %220 = vector.extract_strided_slice %215 {offsets = [0, 96], sizes = [8, 32], strides = [1, 1]} : vector<8x128xf32> to vector<8x32xf32>
    %c0_114 = arith.constant 0 : index
    %c0_115 = arith.constant 0 : index
    %221 = vector.load %arg10[%c0_114, %c0_115] : memref<8x32xf32, #tpu.memory_space<vmem>>, vector<8x32xf32>
    %222 = arith.mulf %218, %221 : vector<8x32xf32>
    %223 = arith.mulf %217, %219 : vector<8x32xf32>
    %224 = arith.addf %222, %223 : vector<8x32xf32>
    %225 = math.tanh %224 : vector<8x32xf32>
    %226 = arith.mulf %220, %225 : vector<8x32xf32>
    %c0_116 = arith.constant 0 : index
    %c0_117 = arith.constant 0 : index
    %227 = vector.load %arg10[%c0_116, %c0_117] : memref<8x32xf32, #tpu.memory_space<vmem>>, vector<8x32xf32>
    tpu.vector_store %arg10[%c0_116, %c0_117], %224 {strides = array<i32>} : memref<8x32xf32, #tpu.memory_space<vmem>>, vector<8x32xf32>,
    %c0_118 = arith.constant 0 : index
    %c0_119 = arith.constant 0 : index
    %228 = vector.load %arg9[%c0_118, %c0_119] : memref<8x32xf32, #tpu.memory_space<vmem>>, vector<8x32xf32>
    tpu.vector_store %arg9[%c0_118, %c0_119], %226 {strides = array<i32>} : memref<8x32xf32, #tpu.memory_space<vmem>>, vector<8x32xf32>,
    %229 = arith.index_cast %205 : i32 to index
    %c0_120 = arith.constant 0 : index
    %230 = vector.load %arg8[%229, %c0_120] : memref<64x32xf32, #tpu.memory_space<vmem>>, vector<8x32xf32>
    tpu.vector_store %arg8[%229, %c0_120], %226 {strides = array<i32>} : memref<64x32xf32, #tpu.memory_space<vmem>>, vector<8x32xf32>,
    %c8_i32_121 = arith.constant 8 : i32
    %c0_122 = arith.constant 0 : index
    %c0_123 = arith.constant 0 : index
    %231 = vector.load %arg8[%c0_122, %c0_123] : memref<64x32xf32, #tpu.memory_space<vmem>>, vector<64x32xf32>
    %c1 = arith.constant 1 : index
    %c0_124 = arith.constant 0 : index
    %c0_125 = arith.constant 0 : index
    %232 = vector.load %arg1[%c1, %c0_124, %c0_125] : memref<2x32x128xf32, #tpu.memory_space<vmem>>, vector<1x32x128xf32>
    %233 = vector.shape_cast %232 : vector<1x32x128xf32> to vector<32x128xf32>
    %cst_126 = arith.constant dense<0.000000e+00> : vector<64x128xf32>
    %234 = tpu.matmul %231, %233, %cst_126 {dimension_numbers = #tpu.dot_dimension_numbers<[1], [0], [0], [1], [0, 0, 1, 1], [], []>} : vector<64x32xf32>, vector<32x128xf32>, vector<64x128xf32> -> vector<64x128xf32>
    %c1_127 = arith.constant 1 : index
    %c0_128 = arith.constant 0 : index
    %c0_129 = arith.constant 0 : index
    %235 = vector.load %arg3[%c1_127, %c0_128, %c0_129] : memref<2x1x128xf32, #tpu.memory_space<vmem>>, vector<1x1x128xf32>
    %236 = vector.shape_cast %235 : vector<1x1x128xf32> to vector<1x128xf32>
    %237 = vector.broadcast %236 : vector<1x128xf32> to vector<64x128xf32>
    %238 = arith.addf %234, %237 : vector<64x128xf32>
    %c0_130 = arith.constant 0 : index
    %c0_131 = arith.constant 0 : index
    %239 = vector.load %arg7[%c0_130, %c0_131] : memref<64x128xf32, #tpu.memory_space<vmem>>, vector<64x128xf32>
    tpu.vector_store %arg7[%c0_130, %c0_131], %238 {strides = array<i32>} : memref<64x128xf32, #tpu.memory_space<vmem>>, vector<64x128xf32>,
    %cst_132 = arith.constant 0.000000e+00 : f32
    %240 = vector.broadcast %cst_132 : f32 to vector<8x32xf32>
    %c0_133 = arith.constant 0 : index
    %c0_134 = arith.constant 0 : index
    %241 = vector.load %arg9[%c0_133, %c0_134] : memref<8x32xf32, #tpu.memory_space<vmem>>, vector<8x32xf32>
    tpu.vector_store %arg9[%c0_133, %c0_134], %240 {strides = array<i32>} : memref<8x32xf32, #tpu.memory_space<vmem>>, vector<8x32xf32>,
    %cst_135 = arith.constant 0.000000e+00 : f32
    %242 = vector.broadcast %cst_135 : f32 to vector<8x32xf32>
    %c0_136 = arith.constant 0 : index
    %c0_137 = arith.constant 0 : index
    %243 = vector.load %arg10[%c0_136, %c0_137] : memref<8x32xf32, #tpu.memory_space<vmem>>, vector<8x32xf32>
    tpu.vector_store %arg10[%c0_136, %c0_137], %242 {strides = array<i32>} : memref<8x32xf32, #tpu.memory_space<vmem>>, vector<8x32xf32>,
    %c1_138 = arith.constant 1 : index
    %c0_139 = arith.constant 0 : index
    %c0_140 = arith.constant 0 : index
    %244 = vector.load %arg2[%c1_138, %c0_139, %c0_140] : memref<2x32x128xf32, #tpu.memory_space<vmem>>, vector<1x32x128xf32>
    %245 = vector.shape_cast %244 : vector<1x32x128xf32> to vector<32x128xf32>
    %c0_i32_141 = arith.constant 0 : i32
    %c8_i32_142 = arith.constant 8 : i32
    %246 = arith.muli %c0_i32_141, %c8_i32_142 : i32
    %247 = tpu.assume_multiple %246, 8 : i32
    %248 = arith.index_cast %247 : i32 to index
    %c0_143 = arith.constant 0 : index
    %249 = vector.load %arg7[%248, %c0_143] : memref<64x128xf32, #tpu.memory_space<vmem>>, vector<8x128xf32>
    %c0_144 = arith.constant 0 : index
    %c0_145 = arith.constant 0 : index
    %250 = vector.load %arg9[%c0_144, %c0_145] : memref<8x32xf32, #tpu.memory_space<vmem>>, vector<8x32xf32>
    %cst_146 = arith.constant dense<0.000000e+00> : vector<8x128xf32>
    %251 = tpu.matmul %250, %245, %cst_146 {dimension_numbers = #tpu.dot_dimension_numbers<[1], [0], [0], [1], [0, 0, 1, 1], [], []>} : vector<8x32xf32>, vector<32x128xf32>, vector<8x128xf32> -> vector<8x128xf32>
    %252 = arith.addf %249, %251 : vector<8x128xf32>
    %253 = arith.negf %252 : vector<8x128xf32>
    %254 = math.exp %253 : vector<8x128xf32>
    %cst_147 = arith.constant 1.000000e+00 : f32
    %255 = vector.broadcast %cst_147 : f32 to vector<8x128xf32>
    %256 = arith.addf %255, %254 : vector<8x128xf32>
    %257 = arith.divf %255, %256 : vector<8x128xf32>
    %258 = math.tanh %252 : vector<8x128xf32>
    %259 = vector.extract_strided_slice %257 {offsets = [0, 0], sizes = [8, 32], strides = [1, 1]} : vector<8x128xf32> to vector<8x32xf32>
    %260 = vector.extract_strided_slice %257 {offsets = [0, 32], sizes = [8, 32], strides = [1, 1]} : vector<8x128xf32> to vector<8x32xf32>
    %261 = vector.extract_strided_slice %258 {offsets = [0, 64], sizes = [8, 32], strides = [1, 1]} : vector<8x128xf32> to vector<8x32xf32>
    %262 = vector.extract_strided_slice %257 {offsets = [0, 96], sizes = [8, 32], strides = [1, 1]} : vector<8x128xf32> to vector<8x32xf32>
    %c0_148 = arith.constant 0 : index
    %c0_149 = arith.constant 0 : index
    %263 = vector.load %arg10[%c0_148, %c0_149] : memref<8x32xf32, #tpu.memory_space<vmem>>, vector<8x32xf32>
    %264 = arith.mulf %260, %263 : vector<8x32xf32>
    %265 = arith.mulf %259, %261 : vector<8x32xf32>
    %266 = arith.addf %264, %265 : vector<8x32xf32>
    %267 = math.tanh %266 : vector<8x32xf32>
    %268 = arith.mulf %262, %267 : vector<8x32xf32>
    %c0_150 = arith.constant 0 : index
    %c0_151 = arith.constant 0 : index
    %269 = vector.load %arg10[%c0_150, %c0_151] : memref<8x32xf32, #tpu.memory_space<vmem>>, vector<8x32xf32>
    tpu.vector_store %arg10[%c0_150, %c0_151], %266 {strides = array<i32>} : memref<8x32xf32, #tpu.memory_space<vmem>>, vector<8x32xf32>,
    %c0_152 = arith.constant 0 : index
    %c0_153 = arith.constant 0 : index
    %270 = vector.load %arg9[%c0_152, %c0_153] : memref<8x32xf32, #tpu.memory_space<vmem>>, vector<8x32xf32>
    tpu.vector_store %arg9[%c0_152, %c0_153], %268 {strides = array<i32>} : memref<8x32xf32, #tpu.memory_space<vmem>>, vector<8x32xf32>,
    %271 = arith.index_cast %247 : i32 to index
    %c0_154 = arith.constant 0 : index
    %272 = vector.load %arg8[%271, %c0_154] : memref<64x32xf32, #tpu.memory_space<vmem>>, vector<8x32xf32>
    tpu.vector_store %arg8[%271, %c0_154], %268 {strides = array<i32>} : memref<64x32xf32, #tpu.memory_space<vmem>>, vector<8x32xf32>,
    %c1_i32_155 = arith.constant 1 : i32
    %c8_i32_156 = arith.constant 8 : i32
    %273 = arith.muli %c1_i32_155, %c8_i32_156 : i32
    %274 = tpu.assume_multiple %273, 8 : i32
    %275 = arith.index_cast %274 : i32 to index
    %c0_157 = arith.constant 0 : index
    %276 = vector.load %arg7[%275, %c0_157] : memref<64x128xf32, #tpu.memory_space<vmem>>, vector<8x128xf32>
    %c0_158 = arith.constant 0 : index
    %c0_159 = arith.constant 0 : index
    %277 = vector.load %arg9[%c0_158, %c0_159] : memref<8x32xf32, #tpu.memory_space<vmem>>, vector<8x32xf32>
    %cst_160 = arith.constant dense<0.000000e+00> : vector<8x128xf32>
    %278 = tpu.matmul %277, %245, %cst_160 {dimension_numbers = #tpu.dot_dimension_numbers<[1], [0], [0], [1], [0, 0, 1, 1], [], []>} : vector<8x32xf32>, vector<32x128xf32>, vector<8x128xf32> -> vector<8x128xf32>
    %279 = arith.addf %276, %278 : vector<8x128xf32>
    %280 = arith.negf %279 : vector<8x128xf32>
    %281 = math.exp %280 : vector<8x128xf32>
    %cst_161 = arith.constant 1.000000e+00 : f32
    %282 = vector.broadcast %cst_161 : f32 to vector<8x128xf32>
    %283 = arith.addf %282, %281 : vector<8x128xf32>
    %284 = arith.divf %282, %283 : vector<8x128xf32>
    %285 = math.tanh %279 : vector<8x128xf32>
    %286 = vector.extract_strided_slice %284 {offsets = [0, 0], sizes = [8, 32], strides = [1, 1]} : vector<8x128xf32> to vector<8x32xf32>
    %287 = vector.extract_strided_slice %284 {offsets = [0, 32], sizes = [8, 32], strides = [1, 1]} : vector<8x128xf32> to vector<8x32xf32>
    %288 = vector.extract_strided_slice %285 {offsets = [0, 64], sizes = [8, 32], strides = [1, 1]} : vector<8x128xf32> to vector<8x32xf32>
    %289 = vector.extract_strided_slice %284 {offsets = [0, 96], sizes = [8, 32], strides = [1, 1]} : vector<8x128xf32> to vector<8x32xf32>
    %c0_162 = arith.constant 0 : index
    %c0_163 = arith.constant 0 : index
    %290 = vector.load %arg10[%c0_162, %c0_163] : memref<8x32xf32, #tpu.memory_space<vmem>>, vector<8x32xf32>
    %291 = arith.mulf %287, %290 : vector<8x32xf32>
    %292 = arith.mulf %286, %288 : vector<8x32xf32>
    %293 = arith.addf %291, %292 : vector<8x32xf32>
    %294 = math.tanh %293 : vector<8x32xf32>
    %295 = arith.mulf %289, %294 : vector<8x32xf32>
    %c0_164 = arith.constant 0 : index
    %c0_165 = arith.constant 0 : index
    %296 = vector.load %arg10[%c0_164, %c0_165] : memref<8x32xf32, #tpu.memory_space<vmem>>, vector<8x32xf32>
    tpu.vector_store %arg10[%c0_164, %c0_165], %293 {strides = array<i32>} : memref<8x32xf32, #tpu.memory_space<vmem>>, vector<8x32xf32>,
    %c0_166 = arith.constant 0 : index
    %c0_167 = arith.constant 0 : index
    %297 = vector.load %arg9[%c0_166, %c0_167] : memref<8x32xf32, #tpu.memory_space<vmem>>, vector<8x32xf32>
    tpu.vector_store %arg9[%c0_166, %c0_167], %295 {strides = array<i32>} : memref<8x32xf32, #tpu.memory_space<vmem>>, vector<8x32xf32>,
    %298 = arith.index_cast %274 : i32 to index
    %c0_168 = arith.constant 0 : index
    %299 = vector.load %arg8[%298, %c0_168] : memref<64x32xf32, #tpu.memory_space<vmem>>, vector<8x32xf32>
    tpu.vector_store %arg8[%298, %c0_168], %295 {strides = array<i32>} : memref<64x32xf32, #tpu.memory_space<vmem>>, vector<8x32xf32>,
    %c2_i32_169 = arith.constant 2 : i32
    %c8_i32_170 = arith.constant 8 : i32
    %300 = arith.muli %c2_i32_169, %c8_i32_170 : i32
    %301 = tpu.assume_multiple %300, 8 : i32
    %302 = arith.index_cast %301 : i32 to index
    %c0_171 = arith.constant 0 : index
    %303 = vector.load %arg7[%302, %c0_171] : memref<64x128xf32, #tpu.memory_space<vmem>>, vector<8x128xf32>
    %c0_172 = arith.constant 0 : index
    %c0_173 = arith.constant 0 : index
    %304 = vector.load %arg9[%c0_172, %c0_173] : memref<8x32xf32, #tpu.memory_space<vmem>>, vector<8x32xf32>
    %cst_174 = arith.constant dense<0.000000e+00> : vector<8x128xf32>
    %305 = tpu.matmul %304, %245, %cst_174 {dimension_numbers = #tpu.dot_dimension_numbers<[1], [0], [0], [1], [0, 0, 1, 1], [], []>} : vector<8x32xf32>, vector<32x128xf32>, vector<8x128xf32> -> vector<8x128xf32>
    %306 = arith.addf %303, %305 : vector<8x128xf32>
    %307 = arith.negf %306 : vector<8x128xf32>
    %308 = math.exp %307 : vector<8x128xf32>
    %cst_175 = arith.constant 1.000000e+00 : f32
    %309 = vector.broadcast %cst_175 : f32 to vector<8x128xf32>
    %310 = arith.addf %309, %308 : vector<8x128xf32>
    %311 = arith.divf %309, %310 : vector<8x128xf32>
    %312 = math.tanh %306 : vector<8x128xf32>
    %313 = vector.extract_strided_slice %311 {offsets = [0, 0], sizes = [8, 32], strides = [1, 1]} : vector<8x128xf32> to vector<8x32xf32>
    %314 = vector.extract_strided_slice %311 {offsets = [0, 32], sizes = [8, 32], strides = [1, 1]} : vector<8x128xf32> to vector<8x32xf32>
    %315 = vector.extract_strided_slice %312 {offsets = [0, 64], sizes = [8, 32], strides = [1, 1]} : vector<8x128xf32> to vector<8x32xf32>
    %316 = vector.extract_strided_slice %311 {offsets = [0, 96], sizes = [8, 32], strides = [1, 1]} : vector<8x128xf32> to vector<8x32xf32>
    %c0_176 = arith.constant 0 : index
    %c0_177 = arith.constant 0 : index
    %317 = vector.load %arg10[%c0_176, %c0_177] : memref<8x32xf32, #tpu.memory_space<vmem>>, vector<8x32xf32>
    %318 = arith.mulf %314, %317 : vector<8x32xf32>
    %319 = arith.mulf %313, %315 : vector<8x32xf32>
    %320 = arith.addf %318, %319 : vector<8x32xf32>
    %321 = math.tanh %320 : vector<8x32xf32>
    %322 = arith.mulf %316, %321 : vector<8x32xf32>
    %c0_178 = arith.constant 0 : index
    %c0_179 = arith.constant 0 : index
    %323 = vector.load %arg10[%c0_178, %c0_179] : memref<8x32xf32, #tpu.memory_space<vmem>>, vector<8x32xf32>
    tpu.vector_store %arg10[%c0_178, %c0_179], %320 {strides = array<i32>} : memref<8x32xf32, #tpu.memory_space<vmem>>, vector<8x32xf32>,
    %c0_180 = arith.constant 0 : index
    %c0_181 = arith.constant 0 : index
    %324 = vector.load %arg9[%c0_180, %c0_181] : memref<8x32xf32, #tpu.memory_space<vmem>>, vector<8x32xf32>
    tpu.vector_store %arg9[%c0_180, %c0_181], %322 {strides = array<i32>} : memref<8x32xf32, #tpu.memory_space<vmem>>, vector<8x32xf32>,
    %325 = arith.index_cast %301 : i32 to index
    %c0_182 = arith.constant 0 : index
    %326 = vector.load %arg8[%325, %c0_182] : memref<64x32xf32, #tpu.memory_space<vmem>>, vector<8x32xf32>
    tpu.vector_store %arg8[%325, %c0_182], %322 {strides = array<i32>} : memref<64x32xf32, #tpu.memory_space<vmem>>, vector<8x32xf32>,
    %c3_i32_183 = arith.constant 3 : i32
    %c8_i32_184 = arith.constant 8 : i32
    %327 = arith.muli %c3_i32_183, %c8_i32_184 : i32
    %328 = tpu.assume_multiple %327, 8 : i32
    %329 = arith.index_cast %328 : i32 to index
    %c0_185 = arith.constant 0 : index
    %330 = vector.load %arg7[%329, %c0_185] : memref<64x128xf32, #tpu.memory_space<vmem>>, vector<8x128xf32>
    %c0_186 = arith.constant 0 : index
    %c0_187 = arith.constant 0 : index
    %331 = vector.load %arg9[%c0_186, %c0_187] : memref<8x32xf32, #tpu.memory_space<vmem>>, vector<8x32xf32>
    %cst_188 = arith.constant dense<0.000000e+00> : vector<8x128xf32>
    %332 = tpu.matmul %331, %245, %cst_188 {dimension_numbers = #tpu.dot_dimension_numbers<[1], [0], [0], [1], [0, 0, 1, 1], [], []>} : vector<8x32xf32>, vector<32x128xf32>, vector<8x128xf32> -> vector<8x128xf32>
    %333 = arith.addf %330, %332 : vector<8x128xf32>
    %334 = arith.negf %333 : vector<8x128xf32>
    %335 = math.exp %334 : vector<8x128xf32>
    %cst_189 = arith.constant 1.000000e+00 : f32
    %336 = vector.broadcast %cst_189 : f32 to vector<8x128xf32>
    %337 = arith.addf %336, %335 : vector<8x128xf32>
    %338 = arith.divf %336, %337 : vector<8x128xf32>
    %339 = math.tanh %333 : vector<8x128xf32>
    %340 = vector.extract_strided_slice %338 {offsets = [0, 0], sizes = [8, 32], strides = [1, 1]} : vector<8x128xf32> to vector<8x32xf32>
    %341 = vector.extract_strided_slice %338 {offsets = [0, 32], sizes = [8, 32], strides = [1, 1]} : vector<8x128xf32> to vector<8x32xf32>
    %342 = vector.extract_strided_slice %339 {offsets = [0, 64], sizes = [8, 32], strides = [1, 1]} : vector<8x128xf32> to vector<8x32xf32>
    %343 = vector.extract_strided_slice %338 {offsets = [0, 96], sizes = [8, 32], strides = [1, 1]} : vector<8x128xf32> to vector<8x32xf32>
    %c0_190 = arith.constant 0 : index
    %c0_191 = arith.constant 0 : index
    %344 = vector.load %arg10[%c0_190, %c0_191] : memref<8x32xf32, #tpu.memory_space<vmem>>, vector<8x32xf32>
    %345 = arith.mulf %341, %344 : vector<8x32xf32>
    %346 = arith.mulf %340, %342 : vector<8x32xf32>
    %347 = arith.addf %345, %346 : vector<8x32xf32>
    %348 = math.tanh %347 : vector<8x32xf32>
    %349 = arith.mulf %343, %348 : vector<8x32xf32>
    %c0_192 = arith.constant 0 : index
    %c0_193 = arith.constant 0 : index
    %350 = vector.load %arg10[%c0_192, %c0_193] : memref<8x32xf32, #tpu.memory_space<vmem>>, vector<8x32xf32>
    tpu.vector_store %arg10[%c0_192, %c0_193], %347 {strides = array<i32>} : memref<8x32xf32, #tpu.memory_space<vmem>>, vector<8x32xf32>,
    %c0_194 = arith.constant 0 : index
    %c0_195 = arith.constant 0 : index
    %351 = vector.load %arg9[%c0_194, %c0_195] : memref<8x32xf32, #tpu.memory_space<vmem>>, vector<8x32xf32>
    tpu.vector_store %arg9[%c0_194, %c0_195], %349 {strides = array<i32>} : memref<8x32xf32, #tpu.memory_space<vmem>>, vector<8x32xf32>,
    %352 = arith.index_cast %328 : i32 to index
    %c0_196 = arith.constant 0 : index
    %353 = vector.load %arg8[%352, %c0_196] : memref<64x32xf32, #tpu.memory_space<vmem>>, vector<8x32xf32>
    tpu.vector_store %arg8[%352, %c0_196], %349 {strides = array<i32>} : memref<64x32xf32, #tpu.memory_space<vmem>>, vector<8x32xf32>,
    %c4_i32_197 = arith.constant 4 : i32
    %c8_i32_198 = arith.constant 8 : i32
    %354 = arith.muli %c4_i32_197, %c8_i32_198 : i32
    %355 = tpu.assume_multiple %354, 8 : i32
    %356 = arith.index_cast %355 : i32 to index
    %c0_199 = arith.constant 0 : index
    %357 = vector.load %arg7[%356, %c0_199] : memref<64x128xf32, #tpu.memory_space<vmem>>, vector<8x128xf32>
    %c0_200 = arith.constant 0 : index
    %c0_201 = arith.constant 0 : index
    %358 = vector.load %arg9[%c0_200, %c0_201] : memref<8x32xf32, #tpu.memory_space<vmem>>, vector<8x32xf32>
    %cst_202 = arith.constant dense<0.000000e+00> : vector<8x128xf32>
    %359 = tpu.matmul %358, %245, %cst_202 {dimension_numbers = #tpu.dot_dimension_numbers<[1], [0], [0], [1], [0, 0, 1, 1], [], []>} : vector<8x32xf32>, vector<32x128xf32>, vector<8x128xf32> -> vector<8x128xf32>
    %360 = arith.addf %357, %359 : vector<8x128xf32>
    %361 = arith.negf %360 : vector<8x128xf32>
    %362 = math.exp %361 : vector<8x128xf32>
    %cst_203 = arith.constant 1.000000e+00 : f32
    %363 = vector.broadcast %cst_203 : f32 to vector<8x128xf32>
    %364 = arith.addf %363, %362 : vector<8x128xf32>
    %365 = arith.divf %363, %364 : vector<8x128xf32>
    %366 = math.tanh %360 : vector<8x128xf32>
    %367 = vector.extract_strided_slice %365 {offsets = [0, 0], sizes = [8, 32], strides = [1, 1]} : vector<8x128xf32> to vector<8x32xf32>
    %368 = vector.extract_strided_slice %365 {offsets = [0, 32], sizes = [8, 32], strides = [1, 1]} : vector<8x128xf32> to vector<8x32xf32>
    %369 = vector.extract_strided_slice %366 {offsets = [0, 64], sizes = [8, 32], strides = [1, 1]} : vector<8x128xf32> to vector<8x32xf32>
    %370 = vector.extract_strided_slice %365 {offsets = [0, 96], sizes = [8, 32], strides = [1, 1]} : vector<8x128xf32> to vector<8x32xf32>
    %c0_204 = arith.constant 0 : index
    %c0_205 = arith.constant 0 : index
    %371 = vector.load %arg10[%c0_204, %c0_205] : memref<8x32xf32, #tpu.memory_space<vmem>>, vector<8x32xf32>
    %372 = arith.mulf %368, %371 : vector<8x32xf32>
    %373 = arith.mulf %367, %369 : vector<8x32xf32>
    %374 = arith.addf %372, %373 : vector<8x32xf32>
    %375 = math.tanh %374 : vector<8x32xf32>
    %376 = arith.mulf %370, %375 : vector<8x32xf32>
    %c0_206 = arith.constant 0 : index
    %c0_207 = arith.constant 0 : index
    %377 = vector.load %arg10[%c0_206, %c0_207] : memref<8x32xf32, #tpu.memory_space<vmem>>, vector<8x32xf32>
    tpu.vector_store %arg10[%c0_206, %c0_207], %374 {strides = array<i32>} : memref<8x32xf32, #tpu.memory_space<vmem>>, vector<8x32xf32>,
    %c0_208 = arith.constant 0 : index
    %c0_209 = arith.constant 0 : index
    %378 = vector.load %arg9[%c0_208, %c0_209] : memref<8x32xf32, #tpu.memory_space<vmem>>, vector<8x32xf32>
    tpu.vector_store %arg9[%c0_208, %c0_209], %376 {strides = array<i32>} : memref<8x32xf32, #tpu.memory_space<vmem>>, vector<8x32xf32>,
    %379 = arith.index_cast %355 : i32 to index
    %c0_210 = arith.constant 0 : index
    %380 = vector.load %arg8[%379, %c0_210] : memref<64x32xf32, #tpu.memory_space<vmem>>, vector<8x32xf32>
    tpu.vector_store %arg8[%379, %c0_210], %376 {strides = array<i32>} : memref<64x32xf32, #tpu.memory_space<vmem>>, vector<8x32xf32>,
    %c5_i32_211 = arith.constant 5 : i32
    %c8_i32_212 = arith.constant 8 : i32
    %381 = arith.muli %c5_i32_211, %c8_i32_212 : i32
    %382 = tpu.assume_multiple %381, 8 : i32
    %383 = arith.index_cast %382 : i32 to index
    %c0_213 = arith.constant 0 : index
    %384 = vector.load %arg7[%383, %c0_213] : memref<64x128xf32, #tpu.memory_space<vmem>>, vector<8x128xf32>
    %c0_214 = arith.constant 0 : index
    %c0_215 = arith.constant 0 : index
    %385 = vector.load %arg9[%c0_214, %c0_215] : memref<8x32xf32, #tpu.memory_space<vmem>>, vector<8x32xf32>
    %cst_216 = arith.constant dense<0.000000e+00> : vector<8x128xf32>
    %386 = tpu.matmul %385, %245, %cst_216 {dimension_numbers = #tpu.dot_dimension_numbers<[1], [0], [0], [1], [0, 0, 1, 1], [], []>} : vector<8x32xf32>, vector<32x128xf32>, vector<8x128xf32> -> vector<8x128xf32>
    %387 = arith.addf %384, %386 : vector<8x128xf32>
    %388 = arith.negf %387 : vector<8x128xf32>
    %389 = math.exp %388 : vector<8x128xf32>
    %cst_217 = arith.constant 1.000000e+00 : f32
    %390 = vector.broadcast %cst_217 : f32 to vector<8x128xf32>
    %391 = arith.addf %390, %389 : vector<8x128xf32>
    %392 = arith.divf %390, %391 : vector<8x128xf32>
    %393 = math.tanh %387 : vector<8x128xf32>
    %394 = vector.extract_strided_slice %392 {offsets = [0, 0], sizes = [8, 32], strides = [1, 1]} : vector<8x128xf32> to vector<8x32xf32>
    %395 = vector.extract_strided_slice %392 {offsets = [0, 32], sizes = [8, 32], strides = [1, 1]} : vector<8x128xf32> to vector<8x32xf32>
    %396 = vector.extract_strided_slice %393 {offsets = [0, 64], sizes = [8, 32], strides = [1, 1]} : vector<8x128xf32> to vector<8x32xf32>
    %397 = vector.extract_strided_slice %392 {offsets = [0, 96], sizes = [8, 32], strides = [1, 1]} : vector<8x128xf32> to vector<8x32xf32>
    %c0_218 = arith.constant 0 : index
    %c0_219 = arith.constant 0 : index
    %398 = vector.load %arg10[%c0_218, %c0_219] : memref<8x32xf32, #tpu.memory_space<vmem>>, vector<8x32xf32>
    %399 = arith.mulf %395, %398 : vector<8x32xf32>
    %400 = arith.mulf %394, %396 : vector<8x32xf32>
    %401 = arith.addf %399, %400 : vector<8x32xf32>
    %402 = math.tanh %401 : vector<8x32xf32>
    %403 = arith.mulf %397, %402 : vector<8x32xf32>
    %c0_220 = arith.constant 0 : index
    %c0_221 = arith.constant 0 : index
    %404 = vector.load %arg10[%c0_220, %c0_221] : memref<8x32xf32, #tpu.memory_space<vmem>>, vector<8x32xf32>
    tpu.vector_store %arg10[%c0_220, %c0_221], %401 {strides = array<i32>} : memref<8x32xf32, #tpu.memory_space<vmem>>, vector<8x32xf32>,
    %c0_222 = arith.constant 0 : index
    %c0_223 = arith.constant 0 : index
    %405 = vector.load %arg9[%c0_222, %c0_223] : memref<8x32xf32, #tpu.memory_space<vmem>>, vector<8x32xf32>
    tpu.vector_store %arg9[%c0_222, %c0_223], %403 {strides = array<i32>} : memref<8x32xf32, #tpu.memory_space<vmem>>, vector<8x32xf32>,
    %406 = arith.index_cast %382 : i32 to index
    %c0_224 = arith.constant 0 : index
    %407 = vector.load %arg8[%406, %c0_224] : memref<64x32xf32, #tpu.memory_space<vmem>>, vector<8x32xf32>
    tpu.vector_store %arg8[%406, %c0_224], %403 {strides = array<i32>} : memref<64x32xf32, #tpu.memory_space<vmem>>, vector<8x32xf32>,
    %c6_i32_225 = arith.constant 6 : i32
    %c8_i32_226 = arith.constant 8 : i32
    %408 = arith.muli %c6_i32_225, %c8_i32_226 : i32
    %409 = tpu.assume_multiple %408, 8 : i32
    %410 = arith.index_cast %409 : i32 to index
    %c0_227 = arith.constant 0 : index
    %411 = vector.load %arg7[%410, %c0_227] : memref<64x128xf32, #tpu.memory_space<vmem>>, vector<8x128xf32>
    %c0_228 = arith.constant 0 : index
    %c0_229 = arith.constant 0 : index
    %412 = vector.load %arg9[%c0_228, %c0_229] : memref<8x32xf32, #tpu.memory_space<vmem>>, vector<8x32xf32>
    %cst_230 = arith.constant dense<0.000000e+00> : vector<8x128xf32>
    %413 = tpu.matmul %412, %245, %cst_230 {dimension_numbers = #tpu.dot_dimension_numbers<[1], [0], [0], [1], [0, 0, 1, 1], [], []>} : vector<8x32xf32>, vector<32x128xf32>, vector<8x128xf32> -> vector<8x128xf32>
    %414 = arith.addf %411, %413 : vector<8x128xf32>
    %415 = arith.negf %414 : vector<8x128xf32>
    %416 = math.exp %415 : vector<8x128xf32>
    %cst_231 = arith.constant 1.000000e+00 : f32
    %417 = vector.broadcast %cst_231 : f32 to vector<8x128xf32>
    %418 = arith.addf %417, %416 : vector<8x128xf32>
    %419 = arith.divf %417, %418 : vector<8x128xf32>
    %420 = math.tanh %414 : vector<8x128xf32>
    %421 = vector.extract_strided_slice %419 {offsets = [0, 0], sizes = [8, 32], strides = [1, 1]} : vector<8x128xf32> to vector<8x32xf32>
    %422 = vector.extract_strided_slice %419 {offsets = [0, 32], sizes = [8, 32], strides = [1, 1]} : vector<8x128xf32> to vector<8x32xf32>
    %423 = vector.extract_strided_slice %420 {offsets = [0, 64], sizes = [8, 32], strides = [1, 1]} : vector<8x128xf32> to vector<8x32xf32>
    %424 = vector.extract_strided_slice %419 {offsets = [0, 96], sizes = [8, 32], strides = [1, 1]} : vector<8x128xf32> to vector<8x32xf32>
    %c0_232 = arith.constant 0 : index
    %c0_233 = arith.constant 0 : index
    %425 = vector.load %arg10[%c0_232, %c0_233] : memref<8x32xf32, #tpu.memory_space<vmem>>, vector<8x32xf32>
    %426 = arith.mulf %422, %425 : vector<8x32xf32>
    %427 = arith.mulf %421, %423 : vector<8x32xf32>
    %428 = arith.addf %426, %427 : vector<8x32xf32>
    %429 = math.tanh %428 : vector<8x32xf32>
    %430 = arith.mulf %424, %429 : vector<8x32xf32>
    %c0_234 = arith.constant 0 : index
    %c0_235 = arith.constant 0 : index
    %431 = vector.load %arg10[%c0_234, %c0_235] : memref<8x32xf32, #tpu.memory_space<vmem>>, vector<8x32xf32>
    tpu.vector_store %arg10[%c0_234, %c0_235], %428 {strides = array<i32>} : memref<8x32xf32, #tpu.memory_space<vmem>>, vector<8x32xf32>,
    %c0_236 = arith.constant 0 : index
    %c0_237 = arith.constant 0 : index
    %432 = vector.load %arg9[%c0_236, %c0_237] : memref<8x32xf32, #tpu.memory_space<vmem>>, vector<8x32xf32>
    tpu.vector_store %arg9[%c0_236, %c0_237], %430 {strides = array<i32>} : memref<8x32xf32, #tpu.memory_space<vmem>>, vector<8x32xf32>,
    %433 = arith.index_cast %409 : i32 to index
    %c0_238 = arith.constant 0 : index
    %434 = vector.load %arg8[%433, %c0_238] : memref<64x32xf32, #tpu.memory_space<vmem>>, vector<8x32xf32>
    tpu.vector_store %arg8[%433, %c0_238], %430 {strides = array<i32>} : memref<64x32xf32, #tpu.memory_space<vmem>>, vector<8x32xf32>,
    %c7_i32_239 = arith.constant 7 : i32
    %c8_i32_240 = arith.constant 8 : i32
    %435 = arith.muli %c7_i32_239, %c8_i32_240 : i32
    %436 = tpu.assume_multiple %435, 8 : i32
    %437 = arith.index_cast %436 : i32 to index
    %c0_241 = arith.constant 0 : index
    %438 = vector.load %arg7[%437, %c0_241] : memref<64x128xf32, #tpu.memory_space<vmem>>, vector<8x128xf32>
    %c0_242 = arith.constant 0 : index
    %c0_243 = arith.constant 0 : index
    %439 = vector.load %arg9[%c0_242, %c0_243] : memref<8x32xf32, #tpu.memory_space<vmem>>, vector<8x32xf32>
    %cst_244 = arith.constant dense<0.000000e+00> : vector<8x128xf32>
    %440 = tpu.matmul %439, %245, %cst_244 {dimension_numbers = #tpu.dot_dimension_numbers<[1], [0], [0], [1], [0, 0, 1, 1], [], []>} : vector<8x32xf32>, vector<32x128xf32>, vector<8x128xf32> -> vector<8x128xf32>
    %441 = arith.addf %438, %440 : vector<8x128xf32>
    %442 = arith.negf %441 : vector<8x128xf32>
    %443 = math.exp %442 : vector<8x128xf32>
    %cst_245 = arith.constant 1.000000e+00 : f32
    %444 = vector.broadcast %cst_245 : f32 to vector<8x128xf32>
    %445 = arith.addf %444, %443 : vector<8x128xf32>
    %446 = arith.divf %444, %445 : vector<8x128xf32>
    %447 = math.tanh %441 : vector<8x128xf32>
    %448 = vector.extract_strided_slice %446 {offsets = [0, 0], sizes = [8, 32], strides = [1, 1]} : vector<8x128xf32> to vector<8x32xf32>
    %449 = vector.extract_strided_slice %446 {offsets = [0, 32], sizes = [8, 32], strides = [1, 1]} : vector<8x128xf32> to vector<8x32xf32>
    %450 = vector.extract_strided_slice %447 {offsets = [0, 64], sizes = [8, 32], strides = [1, 1]} : vector<8x128xf32> to vector<8x32xf32>
    %451 = vector.extract_strided_slice %446 {offsets = [0, 96], sizes = [8, 32], strides = [1, 1]} : vector<8x128xf32> to vector<8x32xf32>
    %c0_246 = arith.constant 0 : index
    %c0_247 = arith.constant 0 : index
    %452 = vector.load %arg10[%c0_246, %c0_247] : memref<8x32xf32, #tpu.memory_space<vmem>>, vector<8x32xf32>
    %453 = arith.mulf %449, %452 : vector<8x32xf32>
    %454 = arith.mulf %448, %450 : vector<8x32xf32>
    %455 = arith.addf %453, %454 : vector<8x32xf32>
    %456 = math.tanh %455 : vector<8x32xf32>
    %457 = arith.mulf %451, %456 : vector<8x32xf32>
    %c0_248 = arith.constant 0 : index
    %c0_249 = arith.constant 0 : index
    %458 = vector.load %arg10[%c0_248, %c0_249] : memref<8x32xf32, #tpu.memory_space<vmem>>, vector<8x32xf32>
    tpu.vector_store %arg10[%c0_248, %c0_249], %455 {strides = array<i32>} : memref<8x32xf32, #tpu.memory_space<vmem>>, vector<8x32xf32>,
    %c0_250 = arith.constant 0 : index
    %c0_251 = arith.constant 0 : index
    %459 = vector.load %arg9[%c0_250, %c0_251] : memref<8x32xf32, #tpu.memory_space<vmem>>, vector<8x32xf32>
    tpu.vector_store %arg9[%c0_250, %c0_251], %457 {strides = array<i32>} : memref<8x32xf32, #tpu.memory_space<vmem>>, vector<8x32xf32>,
    %460 = arith.index_cast %436 : i32 to index
    %c0_252 = arith.constant 0 : index
    %461 = vector.load %arg8[%460, %c0_252] : memref<64x32xf32, #tpu.memory_space<vmem>>, vector<8x32xf32>
    tpu.vector_store %arg8[%460, %c0_252], %457 {strides = array<i32>} : memref<64x32xf32, #tpu.memory_space<vmem>>, vector<8x32xf32>,
    %c8_i32_253 = arith.constant 8 : i32
    %c0_254 = arith.constant 0 : index
    %c0_255 = arith.constant 0 : index
    %462 = vector.load %arg8[%c0_254, %c0_255] : memref<64x32xf32, #tpu.memory_space<vmem>>, vector<64x32xf32>
    %cst_256 = arith.constant 0.000000e+00 : f32
    %463 = vector.broadcast %cst_256 : f32 to vector<64x32xf32>
    %464 = arith.maximumf %462, %463 : vector<64x32xf32>
    %c0_257 = arith.constant 0 : index
    %c0_258 = arith.constant 0 : index
    %465 = vector.load %arg4[%c0_257, %c0_258] : memref<32x128xf32, #tpu.memory_space<vmem>>, vector<32x128xf32>
    %cst_259 = arith.constant dense<0.000000e+00> : vector<64x128xf32>
    %466 = tpu.matmul %464, %465, %cst_259 {dimension_numbers = #tpu.dot_dimension_numbers<[1], [0], [0], [1], [0, 0, 1, 1], [], []>} : vector<64x32xf32>, vector<32x128xf32>, vector<64x128xf32> -> vector<64x128xf32>
    %c0_260 = arith.constant 0 : index
    %c0_261 = arith.constant 0 : index
    %467 = vector.load %arg5[%c0_260, %c0_261] : memref<1x128xf32, #tpu.memory_space<vmem>>, vector<1x128xf32>
    %468 = vector.broadcast %467 : vector<1x128xf32> to vector<64x128xf32>
    %469 = arith.addf %466, %468 : vector<64x128xf32>
    %c0_262 = arith.constant 0 : index
    %c0_263 = arith.constant 0 : index
    %470 = vector.load %arg6[%c0_262, %c0_263] : memref<64x128xf32, #tpu.memory_space<vmem>>, vector<64x128xf32>
    tpu.vector_store %arg6[%c0_262, %c0_263], %469 {strides = array<i32>} : memref<64x128xf32, #tpu.memory_space<vmem>>, vector<64x128xf32>,
    return
  }
}

</mosaic_0001>

<bundles_post_ra>
// kernel: span_detection_lstm.1
= control target key start
LH: loop header
LB: loop body
LE: loop exit
PB: predicated region body
PF: predicated region fallthrough
CT: control target
= control target key end

     0   :  { %vm42_vm0 = vcmask 261120   ;;  %v2950_v2 = vmov 0.0   ;;  %vm2951_vm1 = vmmov 0   ;;  %s2952_s27 = smov 64   ;;  %s2953_s28 = smov 32   ;;  %s3529_s1 = inlined_call_operand.vmem [shape: f32[2,32,128], index: 1, kind: input, shape index: {}]   ;;  %s3530_s0 = inlined_call_operand.vmem [shape: f32[64,32], index: 0, kind: input, shape index: {}]   ;;  %s3531_s2 = inlined_call_operand.vmem [shape: f32[2,32,128], index: 2, kind: input, shape index: {}]   ;;  %s3532_s3 = inlined_call_operand.vmem [shape: f32[2,1,128], index: 3, kind: input, shape index: {}]   ;;  %s3533_s4 = inlined_call_operand.vmem [shape: f32[32,128], index: 4, kind: input, shape index: {}]   ;;  %s3534_s5 = inlined_call_operand.vmem [shape: f32[1,128], index: 5, kind: input, shape index: {}]   ;;  %s3535_s6 = inlined_call_operand.vmem [shape: f32[64,128], index: 6, kind: output, shape index: {}]  }
   0x1   :  { %v34_v0 = vld [vmem:[%s3529_s1 + $0x18] sm:$0xff]  ;;  %v33_v1 = vld [vmem:[%s3529_s1 + $0x10] sm:$0xff]  ;;  %180 = vst.msk [vmem:[#allocation4] sm:$0xff] %vm42_vm0, %v2950_v2  ;;  %181 = vst.msk [vmem:[#allocation5] sm:$0xff] %vm42_vm0, %v2950_v2  ;;  %s2954_s29 = smov 96  }
   0x2   :  { %2809 = vmatprep.subr.mxu1 %v34_v0  ;;  %2573 = vmatprep.subr.mxu0 %v34_v0  ;;  %v32_v3 = vld [vmem:[%s3529_s1 + $0x8] sm:$0xff]  ;;  %v27_v4 = vld [vmem:[%s3530_s0 + $0x20] sm:$0xff]  ;;  %v3016_v7 = vld [vmem:[%s3531_s2 + $0x18] sm:$0xff] }
   0x3   :  { %2813 = vmatpush3.msra.mxu1 %v34_v0  ;;  %2574 = vmatpush3.msra.mxu0 %v34_v0  ;;  %v31_v5 = vld [vmem:[%s3529_s1] sm:$0xff]  ;;  %v28_v6 = vld [vmem:[%s3530_s0 + $0x28] sm:$0xff]  ;;  %v29_v10 = vld [vmem:[%s3530_s0 + $0x30] sm:$0xff] }
   0x4   :  { %2810 = vmatprep.subr.mxu1 %v33_v1  ;;  %2575 = vmatprep.subr.mxu0 %v33_v1  ;;  %v23_v8 = vld [vmem:[%s3530_s0] sm:$0xff]  ;;  %v24_v9 = vld [vmem:[%s3530_s0 + $0x8] sm:$0xff]  ;;  %v3033_v11 = vld [vmem:[%s3531_s2 + $0x10] sm:$0xff] }
   0x5   :  { %2814 = vmatpush3.msra.mxu1 %v33_v1  ;;  %2576 = vmatpush3.msra.mxu0 %v33_v1  ;;  %v30_v12 = vld [vmem:[%s3530_s0 + $0x38] sm:$0xff]  ;;  %v3045_v13 = vld [vmem:[%s3531_s2 + $0x8] sm:$0xff]  ;;  %v3054_v14 = vld [vmem:[%s3531_s2] sm:$0xff] }
   0x6   :  { %2811 = vmatprep.subr.mxu1 %v32_v3  ;;  %2577 = vmatprep.subr.mxu0 %v32_v3  ;;  %v3090_v21 = vld [vmem:[%s3532_s3] ss:$0 sm:$0xff]  ;;  %v25_v62 = vld [vmem:[%s3530_s0 + $0x10] sm:$0xff]  ;;  %v26_v63 = vld [vmem:[%s3530_s0 + $0x18] sm:$0xff] }
   0x7   :  { %2815 = vmatpush3.msra.mxu1 %v32_v3  ;;  %2587 = vmatprep.mubr.msk.f32.mxu1 %vm42_vm0, %v27_v4 }
   0x8   :  { %2812 = vmatprep.subr.mxu1 %v31_v5  ;;  %2578 = vmatpush3.msra.mxu0 %v32_v3  ;;  %v187_v15 = vld [vmem:[#allocation4] sm:$0xff]  ;;  %v269_v28 = vld [vmem:[#allocation5] sm:$0xff] }
   0x9   :  { %2816 = vmatpush3.msra.mxu1 %v31_v5  ;;  %2579 = vmatprep.subr.mxu0 %v31_v5 }
   0xa   :  { %2588 = vmatmul.mubr.msk.f32.vlgmr.msra.gmra.mxu1 %vm42_vm0, %v28_v6  ;;  %2593 = vmatprep.subr.mxu1 %v2950_v2 }
   0xb   :  { %2594 = vmatpush3.msra.mxu1 %v3016_v7  ;;  %2580 = vmatpush3.msra.mxu0 %v31_v5 }
   0xc   :  { %2581 = vmatprep.mubr.msk.f32.mxu0 %vm42_vm0, %v23_v8  ;;  %2595 = vmatprep.subr.mxu1 %v2950_v2 }
   0xd   :  { %2582 = vmatmul.mubr.msk.f32.vlgmr.msra.gmra.mxu0 %vm42_vm0, %v24_v9  ;;  %2590 = vmatprep.mubr.msk.f32.mxu1 %vm42_vm0, %v29_v10 }
   0xe   :  { %2596 = vmatpush3.msra.mxu1 %v3033_v11  ;;  %2615 = vmatprep.subr.mxu0 %v2950_v2 }
   0xf   :  { %2591 = vmatmul.mubr.msk.f32.gmra.mxu1 %vm42_vm0, %v30_v12  ;;  %2597 = vmatprep.subr.mxu1 %v2950_v2 }
  0x10   :  { %2598 = vmatpush3.msra.mxu1 %v3045_v13  ;;  %2601 = vmatprep.mubr.msk.f32.mxu1 %vm2951_vm1, %v2950_v2 }
  0x11   :  { %2599 = vmatprep.subr.mxu1 %v2950_v2  ;;  %2616 = vmatpush3.msra.mxu0 %v3016_v7 }
  0x12   :  { %2600 = vmatpush3.msra.mxu1 %v3054_v14  ;;  %2617 = vmatprep.subr.mxu0 %v2950_v2 }
  0x13   :  { %2602 = vmatmul.mubr.msk.f32.vlgmr.msra.gmra.mxu1 %vm42_vm0, %v187_v15  ;;  %2604 = vmatprep.subr.mxu1 %v2950_v2 }
  0x14   :  { %2605 = vmatpush3.msra.mxu1 %v3016_v7  ;;  %2612 = vmatprep.mubr.msk.f32.mxu1 %vm2951_vm1, %v2950_v2 }
  0x15   :  { %2606 = vmatprep.subr.mxu1 %v2950_v2  ;;  %2618 = vmatpush3.msra.mxu0 %v3033_v11 }
  0x16   :  { %2607 = vmatpush3.msra.mxu1 %v3033_v11  ;;  %2619 = vmatprep.subr.mxu0 %v2950_v2 }
  0x17   :  { %2608 = vmatprep.subr.mxu1 %v2950_v2  ;;  %2620 = vmatpush3.msra.mxu0 %v3045_v13 }
  0x18   :  { %2609 = vmatpush3.msra.mxu1 %v3045_v13  ;;  %2621 = vmatprep.subr.mxu0 %v2950_v2 }
  0x19   :  { %2610 = vmatprep.subr.mxu1 %v2950_v2  ;;  %2622 = vmatpush3.msra.mxu0 %v3054_v14 }
  0x1a   :  { %2611 = vmatpush3.msra.mxu1 %v3054_v14  ;;  %2637 = vmatprep.subr.mxu0 %v2950_v2 }
  0x1b   :  { %2626 = vmatprep.subr.mxu1 %v2950_v2  ;;  %2584 = vmatprep.mubr.msk.f32.mxu0 %vm42_vm0, %v25_v62 }
  0x1c   :  { %2585 = vmatmul.mubr.msk.f32.gmra.mxu0 %vm42_vm0, %v26_v63 }
  0x1d   :  { %2623 = vmatprep.mubr.msk.f32.mxu0 %vm2951_vm1, %v2950_v2 }
  0xca   :  { %v3081_v16 = vpop.f32.mrf.mxu1 }
  0xcc   :  { %v3083_v17 = vpop.f32.mrf.mxu1 }
  0xcd   :  { %v2583_v18 = vpop.f32.mrf.mxu0  ;;  %v154_v62 = vadd.f32 %v3090_v21, %v3083_v17 }
  0xce   :  { %v139_v46 = vadd.f32 %v2583_v18, %v3090_v21 }
  0xcf   :  { %v3085_v19 = vpop.f32.mrf.mxu1  ;;  %v133_v20 = vpop.f32.mrf.mxu0 }
  0xd0   :  { %v134_v23 = vadd.f32 %v3090_v21, %v133_v20 }
  0xd1   :  { %v3092_v22 = vpop.f32.mrf.mxu1 }
  0xd3   :  { %v257_v24 = vpop.f32.mrf.mxu1 }
  0xd4   :  { %v261_v25 = vadd.f32 %v257_v24, %v134_v23 }
  0xd5   :  { %v2603_v26 = vpop.f32.mrf.mxu1 }
  0xd6   :  { %2822 = vtanh.f32 %v261_v25  ;;  %v2399_v29 = vmul.f32 -1.442695, %v261_v25 }
  0xd8   :  { %2824 = vpow2.f32 %v2399_v29 }
  0xdc   :  { %v2586_v8 = vpop.f32.mrf.mxu0 }
  0xde   :  { %v143_v9 = vpop.f32.mrf.mxu0 }
  0xdf   :  { %v144_v10 = vadd.f32 %v3090_v21, %v143_v9 }
  0xe3   :  { %v2823_v27 = vpop.eup %2822 }
  0xe4   :  { %276 = vrot.lane.b32.xlu0 %v2823_v27, %s2952_s27 }
  0xe5   :  { %v2825_v30 = vpop.eup %2824 }
  0xe6   :  { %v265_v31 = vadd.f32 1.0, %v2825_v30 }
  0xe8   :  { %271 = vrot.lane.b32.xlu0 %v269_v28, %s2953_s28  ;;  %2826 = vrcp.f32 %v265_v31 }
  0xf5   :  { %v2827_v32 = vpop.eup %2826 }
 0x156   :  { %v277_v33 = vpop.permute.xlu0 %276 }
 0x157   :  { %v279_v34 = vmul.f32 %v2827_v32, %v277_v33 }
 0x159   :  { %281 = vrot.lane.b32.xlu1 %v279_v34, %s2953_s28 }
 0x15a   :  { %v272_v35 = vpop.permute.xlu0 %271 }
 0x15b   :  { %v274_v36 = vmul.f32 %v2827_v32, %v272_v35 }
 0x1cb   :  { %v282_v37 = vpop.permute.xlu1 %281 }
 0x1cc   :  { %v284_v38 = vadd.f32 %v282_v37, %v274_v36 }
 0x1ce   :  { %2828 = vtanh.f32 %v284_v38 }
 0x1db   :  { %v2829_v39 = vpop.eup %2828 }
 0x1dc   :  { %287 = vrot.lane.b32.xlu1 %v2829_v39, %s2952_s27 }
 0x1e0   :  { %292 = vrot.lane.b32.xlu1 %v284_v38, %s2954_s29 }
 0x24e   :  { %v288_v40 = vpop.permute.xlu1 %287 }
 0x24f   :  { %v290_v41 = vmul.f32 %v2827_v32, %v288_v40  ;;  %v149_v40 = vadd.f32 %v2586_v8, %v3090_v21 }
 0x251   :  { %297 = vrot.lane.b32.xlu0 %v290_v41, %s2953_s28 }
 0x252   :  { %v293_v42 = vpop.permute.xlu1 %292 }
 0x253   :  { %295 = vst.msk [vmem:[#allocation5] sm:$0xff] %vm42_vm0, %v293_v42 }
 0x25a   :  { %v386_v43 = vld [vmem:[#allocation5] sm:$0xff] }
 0x25b   :  { %388 = vrot.lane.b32.xlu1 %v386_v43, %s2953_s28 }
 0x2c3   :  { %v298_v44 = vpop.permute.xlu0 %297 }
 0x2c4   :  { %300 = vst.msk [vmem:[#allocation4] sm:$0xff] %vm42_vm0, %v298_v44  ;;  %301 = vst.msk [vmem:[#allocation3] sm:$0xff] %vm42_vm0, %v298_v44 }
 0x2cb   :  { %v304_v45 = vld [vmem:[#allocation4] sm:$0xff] }
 0x2cc   :  { %2613 = vmatmul.mubr.msk.f32.vlgmr.msra.gmra.mxu1 %vm42_vm0, %v304_v45 }
 0x2cd   :  { %2627 = vmatpush3.msra.mxu1 %v3016_v7  ;;  %2634 = vmatprep.mubr.msk.f32.mxu1 %vm2951_vm1, %v2950_v2  ;;  %v389_v57 = vpop.permute.xlu1 %388 }
 0x2ce   :  { %2628 = vmatprep.subr.mxu1 %v2950_v2 }
 0x2cf   :  { %2629 = vmatpush3.msra.mxu1 %v3033_v11 }
 0x2d0   :  { %2630 = vmatprep.subr.mxu1 %v2950_v2 }
 0x2d1   :  { %2631 = vmatpush3.msra.mxu1 %v3045_v13 }
 0x2d2   :  { %2632 = vmatprep.subr.mxu1 %v2950_v2 }
 0x2d3   :  { %2633 = vmatpush3.msra.mxu1 %v3054_v14 }
 0x2d4   :  { %2648 = vmatprep.subr.mxu1 %v2950_v2 }
 0x38c   :  { %v374_v47 = vpop.f32.mrf.mxu1 }
 0x38d   :  { %v378_v48 = vadd.f32 %v374_v47, %v139_v46 }
 0x38e   :  { %v2614_v49 = vpop.f32.mrf.mxu1 }
 0x38f   :  { %2830 = vtanh.f32 %v378_v48  ;;  %v2401_v51 = vmul.f32 -1.442695, %v378_v48 }
 0x391   :  { %2832 = vpow2.f32 %v2401_v51 }
 0x39c   :  { %v2831_v50 = vpop.eup %2830 }
 0x39d   :  { %393 = vrot.lane.b32.xlu0 %v2831_v50, %s2952_s27 }
 0x39e   :  { %v2833_v52 = vpop.eup %2832 }
 0x39f   :  { %v382_v53 = vadd.f32 1.0, %v2833_v52 }
 0x3a1   :  { %2834 = vrcp.f32 %v382_v53 }
 0x3ae   :  { %v2835_v54 = vpop.eup %2834 }
 0x3af   :  { %v391_v58 = vmul.f32 %v2835_v54, %v389_v57 }
 0x40f   :  { %v394_v55 = vpop.permute.xlu0 %393 }
 0x410   :  { %v396_v56 = vmul.f32 %v2835_v54, %v394_v55 }
 0x412   :  { %398 = vrot.lane.b32.xlu0 %v396_v56, %s2953_s28 }
 0x484   :  { %v399_v59 = vpop.permute.xlu0 %398 }
 0x485   :  { %v401_v60 = vadd.f32 %v399_v59, %v391_v58 }
 0x487   :  { %2836 = vtanh.f32 %v401_v60 }
 0x494   :  { %v2837_v61 = vpop.eup %2836 }
 0x495   :  { %404 = vrot.lane.b32.xlu1 %v2837_v61, %s2952_s27 }
 0x499   :  { %409 = vrot.lane.b32.xlu1 %v401_v60, %s2954_s29 }
 0x507   :  { %v405_v0 = vpop.permute.xlu1 %404 }
 0x508   :  { %v407_v1 = vmul.f32 %v2835_v54, %v405_v0 }
 0x50a   :  { %414 = vrot.lane.b32.xlu0 %v407_v1, %s2953_s28 }
 0x50b   :  { %v410_v3 = vpop.permute.xlu1 %409 }
 0x50c   :  { %412 = vst.msk [vmem:[#allocation5] sm:$0xff] %vm42_vm0, %v410_v3 }
 0x513   :  { %v504_v4 = vld [vmem:[#allocation5] sm:$0xff] }
 0x514   :  { %506 = vrot.lane.b32.xlu1 %v504_v4, %s2953_s28 }
 0x57c   :  { %v415_v5 = vpop.permute.xlu0 %414 }
 0x57d   :  { %417 = vst.msk [vmem:[#allocation4] sm:$0xff] %vm42_vm0, %v415_v5  ;;  %419 = vst.msk [vmem:[#allocation3 + $0x8] sm:$0xff] %vm42_vm0, %v415_v5 }
 0x584   :  { %v422_v6 = vld [vmem:[#allocation4] sm:$0xff] }
 0x585   :  { %2624 = vmatmul.mubr.msk.f32.vlgmr.msra.gmra.mxu0 %vm42_vm0, %v422_v6 }
 0x586   :  { %2638 = vmatpush3.msra.mxu0 %v3016_v7  ;;  %2645 = vmatprep.mubr.msk.f32.mxu0 %vm2951_vm1, %v2950_v2  ;;  %v507_v29 = vpop.permute.xlu1 %506 }
 0x587   :  { %2639 = vmatprep.subr.mxu0 %v2950_v2 }
 0x588   :  { %2640 = vmatpush3.msra.mxu0 %v3033_v11 }
 0x589   :  { %2641 = vmatprep.subr.mxu0 %v2950_v2 }
 0x58a   :  { %2642 = vmatpush3.msra.mxu0 %v3045_v13 }
 0x58b   :  { %2643 = vmatprep.subr.mxu0 %v2950_v2 }
 0x58c   :  { %2644 = vmatpush3.msra.mxu0 %v3054_v14 }
 0x58d   :  { %2659 = vmatprep.subr.mxu0 %v2950_v2 }
 0x645   :  { %v492_v12 = vpop.f32.mrf.mxu0 }
 0x646   :  { %v496_v15 = vadd.f32 %v492_v12, %v144_v10 }
 0x647   :  { %v2625_v18 = vpop.f32.mrf.mxu0 }
 0x648   :  { %2838 = vtanh.f32 %v496_v15  ;;  %v2403_v23 = vmul.f32 -1.442695, %v496_v15 }
 0x64a   :  { %2840 = vpow2.f32 %v2403_v23 }
 0x655   :  { %v2839_v20 = vpop.eup %2838 }
 0x656   :  { %511 = vrot.lane.b32.xlu0 %v2839_v20, %s2952_s27 }
 0x657   :  { %v2841_v24 = vpop.eup %2840 }
 0x658   :  { %v500_v25 = vadd.f32 1.0, %v2841_v24 }
 0x65a   :  { %2842 = vrcp.f32 %v500_v25 }
 0x667   :  { %v2843_v26 = vpop.eup %2842 }
 0x668   :  { %v509_v30 = vmul.f32 %v2843_v26, %v507_v29 }
 0x6c8   :  { %v512_v27 = vpop.permute.xlu0 %511 }
 0x6c9   :  { %v514_v28 = vmul.f32 %v2843_v26, %v512_v27 }
 0x6cb   :  { %516 = vrot.lane.b32.xlu0 %v514_v28, %s2953_s28 }
 0x73d   :  { %v517_v31 = vpop.permute.xlu0 %516 }
 0x73e   :  { %v519_v32 = vadd.f32 %v517_v31, %v509_v30 }
 0x740   :  { %2844 = vtanh.f32 %v519_v32 }
 0x74d   :  { %v2845_v33 = vpop.eup %2844 }
 0x74e   :  { %522 = vrot.lane.b32.xlu1 %v2845_v33, %s2952_s27 }
 0x752   :  { %527 = vrot.lane.b32.xlu1 %v519_v32, %s2954_s29 }
 0x7c0   :  { %v523_v34 = vpop.permute.xlu1 %522 }
 0x7c1   :  { %v525_v35 = vmul.f32 %v2843_v26, %v523_v34 }
 0x7c3   :  { %532 = vrot.lane.b32.xlu0 %v525_v35, %s2953_s28 }
 0x7c4   :  { %v528_v36 = vpop.permute.xlu1 %527 }
 0x7c5   :  { %530 = vst.msk [vmem:[#allocation5] sm:$0xff] %vm42_vm0, %v528_v36 }
 0x7cc   :  { %v622_v37 = vld [vmem:[#allocation5] sm:$0xff] }
 0x7cd   :  { %624 = vrot.lane.b32.xlu1 %v622_v37, %s2953_s28 }
 0x835   :  { %v533_v38 = vpop.permute.xlu0 %532 }
 0x836   :  { %535 = vst.msk [vmem:[#allocation4] sm:$0xff] %vm42_vm0, %v533_v38  ;;  %537 = vst.msk [vmem:[#allocation3 + $0x10] sm:$0xff] %vm42_vm0, %v533_v38 }
 0x83d   :  { %v540_v39 = vld [vmem:[#allocation4] sm:$0xff] }
 0x83e   :  { %2635 = vmatmul.mubr.msk.f32.vlgmr.msra.gmra.mxu1 %vm42_vm0, %v540_v39 }
 0x83f   :  { %2649 = vmatpush3.msra.mxu1 %v3016_v7  ;;  %2656 = vmatprep.mubr.msk.f32.mxu1 %vm2951_vm1, %v2950_v2  ;;  %v625_v51 = vpop.permute.xlu1 %624 }
 0x840   :  { %2650 = vmatprep.subr.mxu1 %v2950_v2 }
 0x841   :  { %2651 = vmatpush3.msra.mxu1 %v3033_v11 }
 0x842   :  { %2652 = vmatprep.subr.mxu1 %v2950_v2 }
 0x843   :  { %2653 = vmatpush3.msra.mxu1 %v3045_v13 }
 0x844   :  { %2654 = vmatprep.subr.mxu1 %v2950_v2 }
 0x845   :  { %2655 = vmatpush3.msra.mxu1 %v3054_v14 }
 0x846   :  { %2670 = vmatprep.subr.mxu1 %v2950_v2 }
 0x8fe   :  { %v610_v41 = vpop.f32.mrf.mxu1 }
 0x8ff   :  { %v614_v42 = vadd.f32 %v610_v41, %v149_v40  ;;  %v2417_v40 = vld [vmem:[%s3529_s1 + $0x38] sm:$0xff] }
 0x900   :  { %v2636_v43 = vpop.f32.mrf.mxu1 }
 0x901   :  { %2846 = vtanh.f32 %v614_v42  ;;  %v2405_v45 = vmul.f32 -1.442695, %v614_v42 }
 0x903   :  { %2848 = vpow2.f32 %v2405_v45 }
 0x90e   :  { %v2847_v44 = vpop.eup %2846 }
 0x90f   :  { %629 = vrot.lane.b32.xlu0 %v2847_v44, %s2952_s27 }
 0x910   :  { %v2849_v46 = vpop.eup %2848 }
 0x911   :  { %v618_v47 = vadd.f32 1.0, %v2849_v46 }
 0x913   :  { %2850 = vrcp.f32 %v618_v47  ;;  %v2416_v47 = vld [vmem:[%s3529_s1 + $0x30] sm:$0xff] }
 0x920   :  { %v2851_v48 = vpop.eup %2850 }
 0x921   :  { %v627_v52 = vmul.f32 %v2851_v48, %v625_v51  ;;  %v1129_v51 = vld [vmem:[#allocation3 + $0x8] sm:$0xff] }
 0x981   :  { %v630_v49 = vpop.permute.xlu0 %629 }
 0x982   :  { %v632_v50 = vmul.f32 %v2851_v48, %v630_v49  ;;  %v2415_v49 = vld [vmem:[%s3529_s1 + $0x28] sm:$0xff] }
 0x984   :  { %634 = vrot.lane.b32.xlu0 %v632_v50, %s2953_s28  ;;  %v2414_v50 = vld [vmem:[%s3529_s1 + $0x20] sm:$0xff] }
 0x9f6   :  { %v635_v53 = vpop.permute.xlu0 %634 }
 0x9f7   :  { %v637_v54 = vadd.f32 %v635_v53, %v627_v52  ;;  %v1130_v52 = vld [vmem:[#allocation3 + $0x10] sm:$0xff] }
 0x9f9   :  { %2852 = vtanh.f32 %v637_v54 }
 0xa06   :  { %v2853_v55 = vpop.eup %2852 }
 0xa07   :  { %640 = vrot.lane.b32.xlu1 %v2853_v55, %s2952_s27 }
 0xa0b   :  { %645 = vrot.lane.b32.xlu1 %v637_v54, %s2954_s29 }
 0xa79   :  { %v641_v56 = vpop.permute.xlu1 %640 }
 0xa7a   :  { %v643_v57 = vmul.f32 %v2851_v48, %v641_v56  ;;  %v1128_v48 = vld [vmem:[#allocation3] sm:$0xff]  ;;  %v164_v56 = vadd.f32 %v3090_v21, %v3092_v22 }
 0xa7c   :  { %650 = vrot.lane.b32.xlu0 %v643_v57, %s2953_s28 }
 0xa7d   :  { %v646_v58 = vpop.permute.xlu1 %645 }
 0xa7e   :  { %648 = vst.msk [vmem:[#allocation5] sm:$0xff] %vm42_vm0, %v646_v58 }
 0xa85   :  { %v740_v59 = vld [vmem:[#allocation5] sm:$0xff] }
 0xa86   :  { %742 = vrot.lane.b32.xlu1 %v740_v59, %s2953_s28 }
 0xaee   :  { %v651_v60 = vpop.permute.xlu0 %650 }
 0xaef   :  { %653 = vst.msk [vmem:[#allocation4] sm:$0xff] %vm42_vm0, %v651_v60  ;;  %655 = vst.msk [vmem:[#allocation3 + $0x18] sm:$0xff] %vm42_vm0, %v651_v60 }
 0xaf6   :  { %v658_v61 = vld [vmem:[#allocation4] sm:$0xff]  ;;  %v1131_v53 = vld [vmem:[#allocation3 + $0x18] sm:$0xff] }
 0xaf7   :  { %2646 = vmatmul.mubr.msk.f32.vlgmr.msra.gmra.mxu0 %vm42_vm0, %v658_v61 }
 0xaf8   :  { %2660 = vmatpush3.msra.mxu0 %v3016_v7  ;;  %2667 = vmatprep.mubr.msk.f32.mxu0 %vm2951_vm1, %v2950_v2  ;;  %v743_v12 = vpop.permute.xlu1 %742 }
 0xaf9   :  { %2661 = vmatprep.subr.mxu0 %v2950_v2 }
 0xafa   :  { %2662 = vmatpush3.msra.mxu0 %v3033_v11 }
 0xafb   :  { %2663 = vmatprep.subr.mxu0 %v2950_v2 }
 0xafc   :  { %2664 = vmatpush3.msra.mxu0 %v3045_v13 }
 0xafd   :  { %2665 = vmatprep.subr.mxu0 %v2950_v2 }
 0xafe   :  { %2666 = vmatpush3.msra.mxu0 %v3054_v14 }
 0xaff   :  { %2681 = vmatprep.subr.mxu0 %v2417_v40 }
 0xbb7   :  { %v728_v63 = vpop.f32.mrf.mxu0 }
 0xbb8   :  { %v732_v0 = vadd.f32 %v728_v63, %v154_v62 }
 0xbb9   :  { %v2647_v1 = vpop.f32.mrf.mxu0 }
 0xbba   :  { %2854 = vtanh.f32 %v732_v0  ;;  %v2407_v4 = vmul.f32 -1.442695, %v732_v0 }
 0xbbc   :  { %2856 = vpow2.f32 %v2407_v4 }
 0xbc7   :  { %v2855_v3 = vpop.eup %2854 }
 0xbc8   :  { %747 = vrot.lane.b32.xlu0 %v2855_v3, %s2952_s27 }
 0xbc9   :  { %v2857_v5 = vpop.eup %2856 }
 0xbca   :  { %v736_v6 = vadd.f32 1.0, %v2857_v5 }
 0xbcc   :  { %2858 = vrcp.f32 %v736_v6 }
 0xbd9   :  { %v2859_v8 = vpop.eup %2858 }
 0xbda   :  { %v745_v15 = vmul.f32 %v2859_v8, %v743_v12 }
 0xc3a   :  { %v748_v9 = vpop.permute.xlu0 %747 }
 0xc3b   :  { %v750_v10 = vmul.f32 %v2859_v8, %v748_v9 }
 0xc3d   :  { %752 = vrot.lane.b32.xlu0 %v750_v10, %s2953_s28 }
 0xcaf   :  { %v753_v17 = vpop.permute.xlu0 %752 }
 0xcb0   :  { %v755_v18 = vadd.f32 %v753_v17, %v745_v15 }
 0xcb2   :  { %2860 = vtanh.f32 %v755_v18 }
 0xcbf   :  { %v2861_v20 = vpop.eup %2860 }
 0xcc0   :  { %758 = vrot.lane.b32.xlu1 %v2861_v20, %s2952_s27 }
 0xcc4   :  { %763 = vrot.lane.b32.xlu1 %v755_v18, %s2954_s29 }
 0xd32   :  { %v759_v23 = vpop.permute.xlu1 %758 }
 0xd33   :  { %v761_v24 = vmul.f32 %v2859_v8, %v759_v23  ;;  %v169_v23 = vadd.f32 %v3085_v19, %v3090_v21 }
 0xd35   :  { %768 = vrot.lane.b32.xlu0 %v761_v24, %s2953_s28 }
 0xd36   :  { %v764_v25 = vpop.permute.xlu1 %763 }
 0xd37   :  { %766 = vst.msk [vmem:[#allocation5] sm:$0xff] %vm42_vm0, %v764_v25 }
 0xd3e   :  { %v858_v26 = vld [vmem:[#allocation5] sm:$0xff] }
 0xd3f   :  { %860 = vrot.lane.b32.xlu1 %v858_v26, %s2953_s28 }
 0xda7   :  { %v769_v27 = vpop.permute.xlu0 %768 }
 0xda8   :  { %771 = vst.msk [vmem:[#allocation4] sm:$0xff] %vm42_vm0, %v769_v27  ;;  %773 = vst.msk [vmem:[#allocation3 + $0x20] sm:$0xff] %vm42_vm0, %v769_v27 }
 0xdaf   :  { %v776_v28 = vld [vmem:[#allocation4] sm:$0xff] }
 0xdb0   :  { %2657 = vmatmul.mubr.msk.f32.vlgmr.msra.gmra.mxu1 %vm42_vm0, %v776_v28  ;;  %v1132_v54 = vld [vmem:[#allocation3 + $0x20] sm:$0xff] }
 0xdb1   :  { %2671 = vmatpush3.msra.mxu1 %v3016_v7  ;;  %2678 = vmatprep.mubr.msk.f32.mxu1 %vm2951_vm1, %v2950_v2  ;;  %v159_v7 = vadd.f32 %v3081_v16, %v3090_v21  ;;  %v861_v36 = vpop.permute.xlu1 %860 }
 0xdb2   :  { %2672 = vmatprep.subr.mxu1 %v2950_v2 }
 0xdb3   :  { %2673 = vmatpush3.msra.mxu1 %v3033_v11 }
 0xdb4   :  { %2674 = vmatprep.subr.mxu1 %v2950_v2 }
 0xdb5   :  { %2675 = vmatpush3.msra.mxu1 %v3045_v13 }
 0xdb6   :  { %2676 = vmatprep.subr.mxu1 %v2950_v2 }
 0xdb7   :  { %2677 = vmatpush3.msra.mxu1 %v3054_v14 }
 0xdb8   :  { %2701 = vmatprep.subr.mxu1 %v2950_v2 }
 0xe70   :  { %v846_v29 = vpop.f32.mrf.mxu1 }
 0xe71   :  { %v850_v30 = vadd.f32 %v846_v29, %v159_v7 }
 0xe72   :  { %v2658_v31 = vpop.f32.mrf.mxu1 }
 0xe73   :  { %2862 = vtanh.f32 %v850_v30  ;;  %v2409_v11 = vmul.f32 -1.442695, %v850_v30 }
 0xe75   :  { %2864 = vpow2.f32 %v2409_v11 }
 0xe80   :  { %v2863_v32 = vpop.eup %2862 }
 0xe81   :  { %865 = vrot.lane.b32.xlu0 %v2863_v32, %s2952_s27 }
 0xe82   :  { %v2865_v33 = vpop.eup %2864 }
 0xe83   :  { %v854_v13 = vadd.f32 1.0, %v2865_v33 }
 0xe85   :  { %2866 = vrcp.f32 %v854_v13 }
 0xe92   :  { %v2867_v34 = vpop.eup %2866 }
 0xe93   :  { %v863_v37 = vmul.f32 %v2867_v34, %v861_v36  ;;  %v3292_v36 = vld [vmem:[%s3531_s2 + $0x20] sm:$0xff] }
 0xef3   :  { %v866_v35 = vpop.permute.xlu0 %865 }
 0xef4   :  { %v868_v14 = vmul.f32 %v2867_v34, %v866_v35  ;;  %v3270_v35 = vld [vmem:[%s3531_s2 + $0x30] sm:$0xff] }
 0xef6   :  { %870 = vrot.lane.b32.xlu0 %v868_v14, %s2953_s28  ;;  %v3278_v14 = vld [vmem:[%s3531_s2 + $0x28] sm:$0xff] }
 0xf68   :  { %v871_v16 = vpop.permute.xlu0 %870 }
 0xf69   :  { %v873_v38 = vadd.f32 %v871_v16, %v863_v37 }
 0xf6b   :  { %2868 = vtanh.f32 %v873_v38 }
 0xf78   :  { %v2869_v39 = vpop.eup %2868 }
 0xf79   :  { %876 = vrot.lane.b32.xlu1 %v2869_v39, %s2952_s27 }
 0xf7d   :  { %881 = vrot.lane.b32.xlu1 %v873_v38, %s2954_s29 }
 0xfeb   :  { %v877_v41 = vpop.permute.xlu1 %876 }
 0xfec   :  { %v879_v42 = vmul.f32 %v2867_v34, %v877_v41  ;;  %v3265_v34 = vld [vmem:[%s3531_s2 + $0x38] sm:$0xff] }
 0xfee   :  { %886 = vrot.lane.b32.xlu0 %v879_v42, %s2953_s28 }
 0xfef   :  { %v882_v43 = vpop.permute.xlu1 %881 }
 0xff0   :  { %884 = vst.msk [vmem:[#allocation5] sm:$0xff] %vm42_vm0, %v882_v43 }
 0xff7   :  { %v976_v44 = vld [vmem:[#allocation5] sm:$0xff] }
 0xff8   :  { %978 = vrot.lane.b32.xlu1 %v976_v44, %s2953_s28 }
0x1060   :  { %v887_v45 = vpop.permute.xlu0 %886 }
0x1061   :  { %889 = vst.msk [vmem:[#allocation4] sm:$0xff] %vm42_vm0, %v887_v45  ;;  %891 = vst.msk [vmem:[#allocation3 + $0x28] sm:$0xff] %vm42_vm0, %v887_v45  ;;  %v3324_v45 = vld [vmem:[%s3532_s3 + $0x1] ss:$0 sm:$0xff] }
0x1068   :  { %v894_v46 = vld [vmem:[#allocation4] sm:$0xff]  ;;  %v1133_v55 = vld [vmem:[#allocation3 + $0x28] sm:$0xff] }
0x1069   :  { %2668 = vmatmul.mubr.msk.f32.vlgmr.msra.gmra.mxu0 %vm42_vm0, %v894_v46 }
0x106a   :  { %2682 = vmatpush3.msra.mxu0 %v2417_v40  ;;  %2689 = vmatprep.mubr.msk.f32.mxu0 %vm42_vm0, %v1128_v48  ;;  %v979_v4 = vpop.permute.xlu1 %978 }
0x106b   :  { %2683 = vmatprep.subr.mxu0 %v2416_v47 }
0x106c   :  { %2684 = vmatpush3.msra.mxu0 %v2416_v47 }
0x106d   :  { %2685 = vmatprep.subr.mxu0 %v2415_v49 }
0x106e   :  { %2686 = vmatpush3.msra.mxu0 %v2415_v49 }
0x106f   :  { %2687 = vmatprep.subr.mxu0 %v2414_v50 }
0x1070   :  { %2688 = vmatpush3.msra.mxu0 %v2414_v50 }
0x1071   :  { %2690 = vmatmul.mubr.msk.f32.vlgmr.msra.gmra.mxu0 %vm42_vm0, %v1129_v51  ;;  %2723 = vmatprep.subr.mxu0 %v2950_v2 }
0x1072   :  { %2692 = vmatprep.mubr.msk.f32.mxu0 %vm42_vm0, %v1130_v52  ;;  %2724 = vmatpush3.msra.mxu0 %v3265_v34 }
0x1073   :  { %2725 = vmatprep.subr.mxu0 %v2950_v2 }
0x1074   :  { %2726 = vmatpush3.msra.mxu0 %v3270_v35 }
0x1075   :  { %2693 = vmatmul.mubr.msk.f32.gmra.mxu0 %vm42_vm0, %v1131_v53  ;;  %2727 = vmatprep.subr.mxu0 %v2950_v2 }
0x1076   :  { %2695 = vmatprep.mubr.msk.f32.mxu0 %vm42_vm0, %v1132_v54  ;;  %2728 = vmatpush3.msra.mxu0 %v3278_v14 }
0x1077   :  { %2729 = vmatprep.subr.mxu0 %v2950_v2 }
0x1078   :  { %2730 = vmatpush3.msra.mxu0 %v3292_v36 }
0x1079   :  { %2696 = vmatmul.mubr.msk.f32.gmra.mxu0 %vm42_vm0, %v1133_v55  ;;  %2745 = vmatprep.subr.mxu0 %v2950_v2 }
0x1129   :  { %v964_v57 = vpop.f32.mrf.mxu0 }
0x112a   :  { %v968_v58 = vadd.f32 %v964_v57, %v164_v56 }
0x112b   :  { %v2669_v59 = vpop.f32.mrf.mxu0 }
0x112c   :  { %2870 = vtanh.f32 %v968_v58  ;;  %v2411_v61 = vmul.f32 -1.442695, %v968_v58 }
0x112e   :  { %2872 = vpow2.f32 %v2411_v61 }
0x1131   :  { %v2691_v43 = vpop.f32.mrf.mxu0 }
0x1133   :  { %v1239_v44 = vpop.f32.mrf.mxu0 }
0x1134   :  { %v1240_v46 = vadd.f32 %v3324_v45, %v1239_v44 }
0x1139   :  { %v2871_v60 = vpop.eup %2870 }
0x113a   :  { %983 = vrot.lane.b32.xlu0 %v2871_v60, %s2952_s27 }
0x113b   :  { %v2873_v62 = vpop.eup %2872 }
0x113c   :  { %v972_v63 = vadd.f32 1.0, %v2873_v62 }
0x113e   :  { %2874 = vrcp.f32 %v972_v63 }
0x114b   :  { %v2875_v0 = vpop.eup %2874 }
0x114c   :  { %v981_v5 = vmul.f32 %v2875_v0, %v979_v4 }
0x11ac   :  { %v984_v1 = vpop.permute.xlu0 %983 }
0x11ad   :  { %v986_v3 = vmul.f32 %v2875_v0, %v984_v1 }
0x11af   :  { %988 = vrot.lane.b32.xlu0 %v986_v3, %s2953_s28 }
0x1221   :  { %v989_v22 = vpop.permute.xlu0 %988 }
0x1222   :  { %v991_v6 = vadd.f32 %v989_v22, %v981_v5  ;;  %v1245_v5 = vadd.f32 %v2691_v43, %v3324_v45 }
0x1224   :  { %2876 = vtanh.f32 %v991_v6 }
0x1231   :  { %v2877_v8 = vpop.eup %2876 }
0x1232   :  { %994 = vrot.lane.b32.xlu1 %v2877_v8, %s2952_s27 }
0x1236   :  { %999 = vrot.lane.b32.xlu1 %v991_v6, %s2954_s29 }
0x12a4   :  { %v995_v9 = vpop.permute.xlu1 %994 }
0x12a5   :  { %v997_v10 = vmul.f32 %v2875_v0, %v995_v9 }
0x12a7   :  { %1004 = vrot.lane.b32.xlu0 %v997_v10, %s2953_s28 }
0x12a8   :  { %v1000_v12 = vpop.permute.xlu1 %999 }
0x12a9   :  { %1002 = vst.msk [vmem:[#allocation5] sm:$0xff] %vm42_vm0, %v1000_v12 }
0x12b0   :  { %v1094_v15 = vld [vmem:[#allocation5] sm:$0xff] }
0x12b1   :  { %1096 = vrot.lane.b32.xlu1 %v1094_v15, %s2953_s28 }
0x1319   :  { %v1005_v17 = vpop.permute.xlu0 %1004 }
0x131a   :  { %1007 = vst.msk [vmem:[#allocation4] sm:$0xff] %vm42_vm0, %v1005_v17  ;;  %1009 = vst.msk [vmem:[#allocation3 + $0x30] sm:$0xff] %vm42_vm0, %v1005_v17 }
0x1321   :  { %v1012_v18 = vld [vmem:[#allocation4] sm:$0xff]  ;;  %v1134_v20 = vld [vmem:[#allocation3 + $0x30] sm:$0xff] }
0x1322   :  { %2679 = vmatmul.mubr.msk.f32.vlgmr.msra.gmra.mxu1 %vm42_vm0, %v1012_v18  ;;  %2698 = vmatprep.mubr.msk.f32.mxu0 %vm42_vm0, %v1134_v20 }
0x1323   :  { %2709 = vmatprep.mubr.msk.f32.mxu1 %vm2951_vm1, %v2950_v2  ;;  %v1097_v11 = vpop.permute.xlu1 %1096  ;;  %2702 = vmatpush3.msra.mxu1 %v3265_v34 }
0x1324   :  { %2703 = vmatprep.subr.mxu1 %v2950_v2 }
0x1325   :  { %2704 = vmatpush3.msra.mxu1 %v3270_v35 }
0x1326   :  { %2705 = vmatprep.subr.mxu1 %v2950_v2 }
0x1327   :  { %2706 = vmatpush3.msra.mxu1 %v3278_v14 }
0x1328   :  { %2707 = vmatprep.subr.mxu1 %v2950_v2 }
0x1329   :  { %2708 = vmatpush3.msra.mxu1 %v3292_v36 }
0x132a   :  { %2712 = vmatprep.subr.mxu1 %v2950_v2 }
0x13e2   :  { %v1082_v24 = vpop.f32.mrf.mxu1 }
0x13e3   :  { %v1086_v25 = vadd.f32 %v1082_v24, %v169_v23 }
0x13e4   :  { %v2680_v26 = vpop.f32.mrf.mxu1 }
0x13e5   :  { %2878 = vtanh.f32 %v1086_v25  ;;  %v2413_v28 = vmul.f32 -1.442695, %v1086_v25 }
0x13e7   :  { %2880 = vpow2.f32 %v2413_v28 }
0x13f2   :  { %v2879_v27 = vpop.eup %2878 }
0x13f3   :  { %1101 = vrot.lane.b32.xlu0 %v2879_v27, %s2952_s27 }
0x13f4   :  { %v2881_v7 = vpop.eup %2880 }
0x13f5   :  { %v1090_v29 = vadd.f32 1.0, %v2881_v7 }
0x13f7   :  { %2882 = vrcp.f32 %v1090_v29 }
0x1404   :  { %v2883_v30 = vpop.eup %2882 }
0x1405   :  { %v1099_v33 = vmul.f32 %v2883_v30, %v1097_v11  ;;  %v2694_v11 = vpop.f32.mrf.mxu0 }
0x1465   :  { %v1102_v31 = vpop.permute.xlu0 %1101 }
0x1466   :  { %v1104_v32 = vmul.f32 %v2883_v30, %v1102_v31 }
0x1468   :  { %1106 = vrot.lane.b32.xlu0 %v1104_v32, %s2953_s28 }
0x14da   :  { %v1107_v19 = vpop.permute.xlu0 %1106 }
0x14db   :  { %v1109_v21 = vadd.f32 %v1107_v19, %v1099_v33  ;;  %v1249_v33 = vpop.f32.mrf.mxu0 }
0x14dd   :  { %2884 = vtanh.f32 %v1109_v21  ;;  %v3368_v19 = vpop.f32.mrf.mxu0 }
0x14ea   :  { %v2885_v13 = vpop.eup %2884 }
0x14eb   :  { %1112 = vrot.lane.b32.xlu1 %v2885_v13, %s2952_s27 }
0x14ef   :  { %1117 = vrot.lane.b32.xlu1 %v1109_v21, %s2954_s29  ;;  %v3370_v21 = vpop.f32.mrf.mxu0 }
0x155d   :  { %v1113_v37 = vpop.permute.xlu1 %1112 }
0x155e   :  { %v1115_v16 = vmul.f32 %v2883_v30, %v1113_v37 }
0x1560   :  { %1122 = vrot.lane.b32.xlu0 %v1115_v16, %s2953_s28  ;;  %v1250_v16 = vadd.f32 %v3324_v45, %v1249_v33 }
0x1561   :  { %v1118_v38 = vpop.permute.xlu1 %1117 }
0x1562   :  { %1120 = vst.msk [vmem:[#allocation5] sm:$0xff] %vm42_vm0, %v1118_v38 }
0x1563   :  { %1287 = vst.msk [vmem:[#allocation5] sm:$0xff] %vm42_vm0, %v2950_v2 }
0x156a   :  { %v1376_v39 = vld [vmem:[#allocation5] sm:$0xff] }
0x156b   :  { %1378 = vrot.lane.b32.xlu1 %v1376_v39, %s2953_s28 }
0x15d2   :  { %v1123_v40 = vpop.permute.xlu0 %1122 }
0x15d3   :  { %1125 = vst.msk [vmem:[#allocation4] sm:$0xff] %vm42_vm0, %v1123_v40  ;;  %1127 = vst.msk [vmem:[#allocation3 + $0x38] sm:$0xff] %vm42_vm0, %v1123_v40 }
0x15d4   :  { %1286 = vst.msk [vmem:[#allocation4] sm:$0xff] %vm42_vm0, %v2950_v2 }
0x15da   :  { %v1135_v41 = vld [vmem:[#allocation3 + $0x38] sm:$0xff] }
0x15db   :  { %2699 = vmatmul.mubr.msk.f32.gmra.mxu0 %vm42_vm0, %v1135_v41  ;;  %v1294_v42 = vld [vmem:[#allocation4] sm:$0xff] }
0x15dc   :  { %2710 = vmatmul.mubr.msk.f32.vlgmr.msra.gmra.mxu1 %vm42_vm0, %v1294_v42  ;;  %2731 = vmatprep.mubr.msk.f32.mxu0 %vm2951_vm1, %v2950_v2 }
0x15dd   :  { %2713 = vmatpush3.msra.mxu1 %v3265_v34  ;;  %2720 = vmatprep.mubr.msk.f32.mxu1 %vm2951_vm1, %v2950_v2  ;;  %v1379_v57 = vpop.permute.xlu1 %1378 }
0x15de   :  { %2714 = vmatprep.subr.mxu1 %v2950_v2 }
0x15df   :  { %2715 = vmatpush3.msra.mxu1 %v3270_v35 }
0x15e0   :  { %2716 = vmatprep.subr.mxu1 %v2950_v2 }
0x15e1   :  { %2717 = vmatpush3.msra.mxu1 %v3278_v14 }
0x15e2   :  { %2718 = vmatprep.subr.mxu1 %v2950_v2 }
0x15e3   :  { %2719 = vmatpush3.msra.mxu1 %v3292_v36 }
0x15e4   :  { %2734 = vmatprep.subr.mxu1 %v2950_v2 }
0x169b   :  { %v3372_v13 = vpop.f32.mrf.mxu0 }
0x169c   :  { %v1364_v47 = vpop.f32.mrf.mxu1 }
0x169d   :  { %v1368_v48 = vadd.f32 %v1364_v47, %v1240_v46  ;;  %v3374_v37 = vpop.f32.mrf.mxu0 }
0x169e   :  { %v2711_v49 = vpop.f32.mrf.mxu1 }
0x169f   :  { %2886 = vtanh.f32 %v1368_v48  ;;  %v2433_v51 = vmul.f32 -1.442695, %v1368_v48 }
0x16a1   :  { %2888 = vpow2.f32 %v2433_v51 }
0x16ac   :  { %v2887_v50 = vpop.eup %2886 }
0x16ad   :  { %1383 = vrot.lane.b32.xlu0 %v2887_v50, %s2952_s27 }
0x16ae   :  { %v2889_v52 = vpop.eup %2888 }
0x16af   :  { %v1372_v53 = vadd.f32 1.0, %v2889_v52 }
0x16b1   :  { %2890 = vrcp.f32 %v1372_v53 }
0x16be   :  { %v2891_v54 = vpop.eup %2890 }
0x16bf   :  { %v1381_v58 = vmul.f32 %v2891_v54, %v1379_v57 }
0x171f   :  { %v1384_v55 = vpop.permute.xlu0 %1383 }
0x1720   :  { %v1386_v56 = vmul.f32 %v2891_v54, %v1384_v55 }
0x1722   :  { %1388 = vrot.lane.b32.xlu0 %v1386_v56, %s2953_s28 }
0x1794   :  { %v1389_v59 = vpop.permute.xlu0 %1388 }
0x1795   :  { %v1391_v60 = vadd.f32 %v1389_v59, %v1381_v58 }
0x1797   :  { %2892 = vtanh.f32 %v1391_v60 }
0x17a4   :  { %v2893_v61 = vpop.eup %2892 }
0x17a5   :  { %1394 = vrot.lane.b32.xlu1 %v2893_v61, %s2952_s27 }
0x17a9   :  { %1399 = vrot.lane.b32.xlu1 %v1391_v60, %s2954_s29  ;;  %v1255_v60 = vadd.f32 %v2694_v11, %v3324_v45 }
0x1817   :  { %v1395_v62 = vpop.permute.xlu1 %1394 }
0x1818   :  { %v1397_v63 = vmul.f32 %v2891_v54, %v1395_v62 }
0x181a   :  { %1404 = vrot.lane.b32.xlu0 %v1397_v63, %s2953_s28 }
0x181b   :  { %v1400_v0 = vpop.permute.xlu1 %1399 }
0x181c   :  { %1402 = vst.msk [vmem:[#allocation5] sm:$0xff] %vm42_vm0, %v1400_v0 }
0x1823   :  { %v1492_v1 = vld [vmem:[#allocation5] sm:$0xff] }
0x1824   :  { %1494 = vrot.lane.b32.xlu1 %v1492_v1, %s2953_s28 }
0x188c   :  { %v1405_v3 = vpop.permute.xlu0 %1404 }
0x188d   :  { %1407 = vst.msk [vmem:[#allocation4] sm:$0xff] %vm42_vm0, %v1405_v3  ;;  %1408 = vst.msk [vmem:[#allocation3] sm:$0xff] %vm42_vm0, %v1405_v3 }
0x1894   :  { %v1410_v4 = vld [vmem:[#allocation4] sm:$0xff] }
0x1895   :  { %2721 = vmatmul.mubr.msk.f32.vlgmr.msra.gmra.mxu1 %vm42_vm0, %v1410_v4 }
0x1896   :  { %2735 = vmatpush3.msra.mxu1 %v3265_v34  ;;  %2742 = vmatprep.mubr.msk.f32.mxu1 %vm2951_vm1, %v2950_v2  ;;  %v1495_v23 = vpop.permute.xlu1 %1494 }
0x1897   :  { %2736 = vmatprep.subr.mxu1 %v2950_v2 }
0x1898   :  { %2737 = vmatpush3.msra.mxu1 %v3270_v35 }
0x1899   :  { %2738 = vmatprep.subr.mxu1 %v2950_v2 }
0x189a   :  { %2739 = vmatpush3.msra.mxu1 %v3278_v14 }
0x189b   :  { %2740 = vmatprep.subr.mxu1 %v2950_v2 }
0x189c   :  { %2741 = vmatpush3.msra.mxu1 %v3292_v36 }
0x189d   :  { %2756 = vmatprep.subr.mxu1 %v2950_v2 }
0x1955   :  { %v1480_v22 = vpop.f32.mrf.mxu1 }
0x1956   :  { %v1484_v6 = vadd.f32 %v1480_v22, %v1245_v5 }
0x1957   :  { %v2722_v8 = vpop.f32.mrf.mxu1 }
0x1958   :  { %2894 = vtanh.f32 %v1484_v6  ;;  %v2435_v10 = vmul.f32 -1.442695, %v1484_v6 }
0x195a   :  { %2896 = vpow2.f32 %v2435_v10 }
0x1965   :  { %v2895_v9 = vpop.eup %2894 }
0x1966   :  { %1499 = vrot.lane.b32.xlu0 %v2895_v9, %s2952_s27 }
0x1967   :  { %v2897_v12 = vpop.eup %2896 }
0x1968   :  { %v1488_v15 = vadd.f32 1.0, %v2897_v12 }
0x196a   :  { %2898 = vrcp.f32 %v1488_v15 }
0x1977   :  { %v2899_v17 = vpop.eup %2898 }
0x1978   :  { %v1497_v24 = vmul.f32 %v2899_v17, %v1495_v23 }
0x19d8   :  { %v1500_v18 = vpop.permute.xlu0 %1499 }
0x19d9   :  { %v1502_v20 = vmul.f32 %v2899_v17, %v1500_v18 }
0x19db   :  { %1504 = vrot.lane.b32.xlu0 %v1502_v20, %s2953_s28 }
0x1a4d   :  { %v1505_v25 = vpop.permute.xlu0 %1504 }
0x1a4e   :  { %v1507_v26 = vadd.f32 %v1505_v25, %v1497_v24 }
0x1a50   :  { %2900 = vtanh.f32 %v1507_v26 }
0x1a5d   :  { %v2901_v27 = vpop.eup %2900 }
0x1a5e   :  { %1510 = vrot.lane.b32.xlu1 %v2901_v27, %s2952_s27 }
0x1a62   :  { %1515 = vrot.lane.b32.xlu1 %v1507_v26, %s2954_s29  ;;  %v1260_v26 = vadd.f32 %v3324_v45, %v3370_v21 }
0x1ad0   :  { %v1511_v28 = vpop.permute.xlu1 %1510 }
0x1ad1   :  { %v1513_v7 = vmul.f32 %v2899_v17, %v1511_v28 }
0x1ad3   :  { %1520 = vrot.lane.b32.xlu0 %v1513_v7, %s2953_s28 }
0x1ad4   :  { %v1516_v29 = vpop.permute.xlu1 %1515 }
0x1ad5   :  { %1518 = vst.msk [vmem:[#allocation5] sm:$0xff] %vm42_vm0, %v1516_v29 }
0x1adc   :  { %v1608_v30 = vld [vmem:[#allocation5] sm:$0xff] }
0x1add   :  { %1610 = vrot.lane.b32.xlu1 %v1608_v30, %s2953_s28 }
0x1b45   :  { %v1521_v31 = vpop.permute.xlu0 %1520 }
0x1b46   :  { %1523 = vst.msk [vmem:[#allocation4] sm:$0xff] %vm42_vm0, %v1521_v31  ;;  %1524 = vst.msk [vmem:[#allocation3 + $0x8] sm:$0xff] %vm42_vm0, %v1521_v31 }
0x1b4d   :  { %v1526_v32 = vld [vmem:[#allocation4] sm:$0xff] }
0x1b4e   :  { %2732 = vmatmul.mubr.msk.f32.vlgmr.msra.gmra.mxu0 %vm42_vm0, %v1526_v32 }
0x1b4f   :  { %2746 = vmatpush3.msra.mxu0 %v3265_v34  ;;  %2753 = vmatprep.mubr.msk.f32.mxu0 %vm2951_vm1, %v2950_v2  ;;  %v1611_v49 = vpop.permute.xlu1 %1610 }
0x1b50   :  { %2747 = vmatprep.subr.mxu0 %v2950_v2 }
0x1b51   :  { %2748 = vmatpush3.msra.mxu0 %v3270_v35 }
0x1b52   :  { %2749 = vmatprep.subr.mxu0 %v2950_v2 }
0x1b53   :  { %2750 = vmatpush3.msra.mxu0 %v3278_v14 }
0x1b54   :  { %2751 = vmatprep.subr.mxu0 %v2950_v2 }
0x1b55   :  { %2752 = vmatpush3.msra.mxu0 %v3292_v36 }
0x1b56   :  { %2767 = vmatprep.subr.mxu0 %v2950_v2 }
0x1c0e   :  { %v1596_v38 = vpop.f32.mrf.mxu0 }
0x1c0f   :  { %v1600_v39 = vadd.f32 %v1596_v38, %v1250_v16 }
0x1c10   :  { %v2733_v40 = vpop.f32.mrf.mxu0 }
0x1c11   :  { %2902 = vtanh.f32 %v1600_v39  ;;  %v2437_v42 = vmul.f32 -1.442695, %v1600_v39 }
0x1c13   :  { %2904 = vpow2.f32 %v2437_v42 }
0x1c1e   :  { %v2903_v41 = vpop.eup %2902 }
0x1c1f   :  { %1615 = vrot.lane.b32.xlu0 %v2903_v41, %s2952_s27 }
0x1c20   :  { %v2905_v43 = vpop.eup %2904 }
0x1c21   :  { %v1604_v44 = vadd.f32 1.0, %v2905_v43 }
0x1c23   :  { %2906 = vrcp.f32 %v1604_v44 }
0x1c30   :  { %v2907_v46 = vpop.eup %2906 }
0x1c31   :  { %v1613_v50 = vmul.f32 %v2907_v46, %v1611_v49  ;;  %v1265_v49 = vadd.f32 %v3368_v19, %v3324_v45 }
0x1c91   :  { %v1616_v47 = vpop.permute.xlu0 %1615 }
0x1c92   :  { %v1618_v48 = vmul.f32 %v2907_v46, %v1616_v47 }
0x1c94   :  { %1620 = vrot.lane.b32.xlu0 %v1618_v48, %s2953_s28 }
0x1d06   :  { %v1621_v51 = vpop.permute.xlu0 %1620 }
0x1d07   :  { %v1623_v52 = vadd.f32 %v1621_v51, %v1613_v50 }
0x1d09   :  { %2908 = vtanh.f32 %v1623_v52 }
0x1d16   :  { %v2909_v53 = vpop.eup %2908 }
0x1d17   :  { %1626 = vrot.lane.b32.xlu1 %v2909_v53, %s2952_s27 }
0x1d1b   :  { %1631 = vrot.lane.b32.xlu1 %v1623_v52, %s2954_s29 }
0x1d89   :  { %v1627_v54 = vpop.permute.xlu1 %1626 }
0x1d8a   :  { %v1629_v55 = vmul.f32 %v2907_v46, %v1627_v54 }
0x1d8c   :  { %1636 = vrot.lane.b32.xlu0 %v1629_v55, %s2953_s28 }
0x1d8d   :  { %v1632_v56 = vpop.permute.xlu1 %1631 }
0x1d8e   :  { %1634 = vst.msk [vmem:[#allocation5] sm:$0xff] %vm42_vm0, %v1632_v56 }
0x1d95   :  { %v1724_v57 = vld [vmem:[#allocation5] sm:$0xff] }
0x1d96   :  { %1726 = vrot.lane.b32.xlu1 %v1724_v57, %s2953_s28 }
0x1dfe   :  { %v1637_v58 = vpop.permute.xlu0 %1636 }
0x1dff   :  { %1639 = vst.msk [vmem:[#allocation4] sm:$0xff] %vm42_vm0, %v1637_v58  ;;  %1640 = vst.msk [vmem:[#allocation3 + $0x10] sm:$0xff] %vm42_vm0, %v1637_v58 }
0x1e06   :  { %v1642_v59 = vld [vmem:[#allocation4] sm:$0xff] }
0x1e07   :  { %2743 = vmatmul.mubr.msk.f32.vlgmr.msra.gmra.mxu1 %vm42_vm0, %v1642_v59  ;;  %v2240_v59 = vld [vmem:[%s3533_s4 + $0x18] sm:$0xff] }
0x1e08   :  { %2757 = vmatpush3.msra.mxu1 %v3265_v34  ;;  %2764 = vmatprep.mubr.msk.f32.mxu1 %vm2951_vm1, %v2950_v2  ;;  %v1727_v8 = vpop.permute.xlu1 %1726 }
0x1e09   :  { %2758 = vmatprep.subr.mxu1 %v2950_v2 }
0x1e0a   :  { %2759 = vmatpush3.msra.mxu1 %v3270_v35 }
0x1e0b   :  { %2760 = vmatprep.subr.mxu1 %v2950_v2 }
0x1e0c   :  { %2761 = vmatpush3.msra.mxu1 %v3278_v14 }
0x1e0d   :  { %2762 = vmatprep.subr.mxu1 %v2950_v2 }
0x1e0e   :  { %2763 = vmatpush3.msra.mxu1 %v3292_v36 }
0x1e0f   :  { %2778 = vmatprep.subr.mxu1 %v2950_v2 }
0x1ec7   :  { %v1712_v61 = vpop.f32.mrf.mxu1 }
0x1ec8   :  { %v1716_v62 = vadd.f32 %v1712_v61, %v1255_v60 }
0x1ec9   :  { %v2744_v63 = vpop.f32.mrf.mxu1 }
0x1eca   :  { %2910 = vtanh.f32 %v1716_v62  ;;  %v2439_v1 = vmul.f32 -1.442695, %v1716_v62 }
0x1ecc   :  { %2912 = vpow2.f32 %v2439_v1  ;;  %v2221_v1 = vld [vmem:[#allocation3] sm:$0xff] }
0x1ed7   :  { %v2911_v0 = vpop.eup %2910 }
0x1ed8   :  { %1731 = vrot.lane.b32.xlu0 %v2911_v0, %s2952_s27 }
0x1ed9   :  { %v2913_v3 = vpop.eup %2912 }
0x1eda   :  { %v1720_v4 = vadd.f32 1.0, %v2913_v3 }
0x1edc   :  { %2914 = vrcp.f32 %v1720_v4  ;;  %v2239_v4 = vld [vmem:[%s3533_s4 + $0x10] sm:$0xff] }
0x1ee9   :  { %v2915_v5 = vpop.eup %2914 }
0x1eea   :  { %v1729_v9 = vmul.f32 %v2915_v5, %v1727_v8  ;;  %v2222_v8 = vld [vmem:[#allocation3 + $0x8] sm:$0xff] }
0x1f4a   :  { %v1732_v22 = vpop.permute.xlu0 %1731 }
0x1f4b   :  { %v1734_v6 = vmul.f32 %v2915_v5, %v1732_v22  ;;  %v2238_v22 = vld [vmem:[%s3533_s4 + $0x8] sm:$0xff] }
0x1f4d   :  { %1736 = vrot.lane.b32.xlu0 %v1734_v6, %s2953_s28  ;;  %v2237_v6 = vld [vmem:[%s3533_s4] sm:$0xff] }
0x1fbf   :  { %v1737_v10 = vpop.permute.xlu0 %1736 }
0x1fc0   :  { %v1739_v12 = vadd.f32 %v1737_v10, %v1729_v9  ;;  %v2223_v9 = vld [vmem:[#allocation3 + $0x10] sm:$0xff]  ;;  %v2230_v10 = vmax.f32 %v2222_v8, 0.0 }
0x1fc2   :  { %2916 = vtanh.f32 %v1739_v12 }
0x1fcf   :  { %v2917_v15 = vpop.eup %2916 }
0x1fd0   :  { %1742 = vrot.lane.b32.xlu1 %v2917_v15, %s2952_s27 }
0x1fd4   :  { %1747 = vrot.lane.b32.xlu1 %v1739_v12, %s2954_s29  ;;  %v2231_v12 = vmax.f32 %v2223_v9, 0.0 }
0x2042   :  { %v1743_v17 = vpop.permute.xlu1 %1742 }
0x2043   :  { %v1745_v18 = vmul.f32 %v2915_v5, %v1743_v17  ;;  %v2229_v5 = vmax.f32 %v2221_v1, 0.0 }
0x2045   :  { %1752 = vrot.lane.b32.xlu0 %v1745_v18, %s2953_s28 }
0x2046   :  { %v1748_v20 = vpop.permute.xlu1 %1747 }
0x2047   :  { %1750 = vst.msk [vmem:[#allocation5] sm:$0xff] %vm42_vm0, %v1748_v20 }
0x204e   :  { %v1840_v23 = vld [vmem:[#allocation5] sm:$0xff] }
0x204f   :  { %1842 = vrot.lane.b32.xlu1 %v1840_v23, %s2953_s28 }
0x20b7   :  { %v1753_v24 = vpop.permute.xlu0 %1752 }
0x20b8   :  { %1755 = vst.msk [vmem:[#allocation4] sm:$0xff] %vm42_vm0, %v1753_v24  ;;  %1756 = vst.msk [vmem:[#allocation3 + $0x18] sm:$0xff] %vm42_vm0, %v1753_v24 }
0x20bf   :  { %v1758_v25 = vld [vmem:[#allocation4] sm:$0xff]  ;;  %v2224_v15 = vld [vmem:[#allocation3 + $0x18] sm:$0xff] }
0x20c0   :  { %2754 = vmatmul.mubr.msk.f32.vlgmr.msra.gmra.mxu0 %vm42_vm0, %v1758_v25  ;;  %v2232_v18 = vmax.f32 %v2224_v15, 0.0  ;;  %v1270_v25 = vadd.f32 %v3324_v45, %v3374_v37 }
0x20c1   :  { %2768 = vmatpush3.msra.mxu0 %v3265_v34  ;;  %2775 = vmatprep.mubr.msk.f32.mxu0 %vm2951_vm1, %v2950_v2  ;;  %v1843_v38 = vpop.permute.xlu1 %1842 }
0x20c2   :  { %2769 = vmatprep.subr.mxu0 %v2950_v2 }
0x20c3   :  { %2770 = vmatpush3.msra.mxu0 %v3270_v35 }
0x20c4   :  { %2771 = vmatprep.subr.mxu0 %v2950_v2 }
0x20c5   :  { %2772 = vmatpush3.msra.mxu0 %v3278_v14 }
0x20c6   :  { %2773 = vmatprep.subr.mxu0 %v2950_v2 }
0x20c7   :  { %2774 = vmatpush3.msra.mxu0 %v3292_v36 }
0x20c8   :  { %2789 = vmatprep.subr.mxu0 %v2240_v59 }
0x2180   :  { %v1828_v27 = vpop.f32.mrf.mxu0 }
0x2181   :  { %v1832_v28 = vadd.f32 %v1828_v27, %v1260_v26 }
0x2182   :  { %v2755_v7 = vpop.f32.mrf.mxu0 }
0x2183   :  { %2918 = vtanh.f32 %v1832_v28  ;;  %v2441_v30 = vmul.f32 -1.442695, %v1832_v28  ;;  %v3473_v7 = vld [vmem:[%s3534_s5] ss:$0 sm:$0xff] }
0x2185   :  { %2920 = vpow2.f32 %v2441_v30 }
0x2190   :  { %v2919_v29 = vpop.eup %2918 }
0x2191   :  { %1847 = vrot.lane.b32.xlu0 %v2919_v29, %s2952_s27 }
0x2192   :  { %v2921_v31 = vpop.eup %2920 }
0x2193   :  { %v1836_v32 = vadd.f32 1.0, %v2921_v31 }
0x2195   :  { %2922 = vrcp.f32 %v1836_v32 }
0x21a2   :  { %v2923_v11 = vpop.eup %2922 }
0x21a3   :  { %v1845_v39 = vmul.f32 %v2923_v11, %v1843_v38 }
0x2203   :  { %v1848_v33 = vpop.permute.xlu0 %1847 }
0x2204   :  { %v1850_v16 = vmul.f32 %v2923_v11, %v1848_v33 }
0x2206   :  { %1852 = vrot.lane.b32.xlu0 %v1850_v16, %s2953_s28 }
0x2278   :  { %v1853_v21 = vpop.permute.xlu0 %1852 }
0x2279   :  { %v1855_v40 = vadd.f32 %v1853_v21, %v1845_v39 }
0x227b   :  { %2924 = vtanh.f32 %v1855_v40 }
0x2288   :  { %v2925_v41 = vpop.eup %2924 }
0x2289   :  { %1858 = vrot.lane.b32.xlu1 %v2925_v41, %s2952_s27 }
0x228d   :  { %1863 = vrot.lane.b32.xlu1 %v1855_v40, %s2954_s29 }
0x22fb   :  { %v1859_v42 = vpop.permute.xlu1 %1858 }
0x22fc   :  { %v1861_v43 = vmul.f32 %v2923_v11, %v1859_v42 }
0x22fe   :  { %1868 = vrot.lane.b32.xlu0 %v1861_v43, %s2953_s28 }
0x22ff   :  { %v1864_v44 = vpop.permute.xlu1 %1863 }
0x2300   :  { %1866 = vst.msk [vmem:[#allocation5] sm:$0xff] %vm42_vm0, %v1864_v44 }
0x2307   :  { %v1956_v46 = vld [vmem:[#allocation5] sm:$0xff] }
0x2308   :  { %1958 = vrot.lane.b32.xlu1 %v1956_v46, %s2953_s28 }
0x2370   :  { %v1869_v47 = vpop.permute.xlu0 %1868 }
0x2371   :  { %1871 = vst.msk [vmem:[#allocation4] sm:$0xff] %vm42_vm0, %v1869_v47  ;;  %1872 = vst.msk [vmem:[#allocation3 + $0x20] sm:$0xff] %vm42_vm0, %v1869_v47 }
0x2378   :  { %v1874_v48 = vld [vmem:[#allocation4] sm:$0xff] }
0x2379   :  { %2765 = vmatmul.mubr.msk.f32.vlgmr.msra.gmra.mxu1 %vm42_vm0, %v1874_v48  ;;  %v2225_v17 = vld [vmem:[#allocation3 + $0x20] sm:$0xff] }
0x237a   :  { %2779 = vmatpush3.msra.mxu1 %v3265_v34  ;;  %2786 = vmatprep.mubr.msk.f32.mxu1 %vm2951_vm1, %v2950_v2  ;;  %v2233_v20 = vmax.f32 %v2225_v17, 0.0 }
0x237b   :  { %2780 = vmatprep.subr.mxu1 %v2950_v2 }
0x237c   :  { %2781 = vmatpush3.msra.mxu1 %v3270_v35 }
0x237d   :  { %2782 = vmatprep.subr.mxu1 %v2950_v2 }
0x237e   :  { %2783 = vmatpush3.msra.mxu1 %v3278_v14 }
0x237f   :  { %2784 = vmatprep.subr.mxu1 %v2950_v2 }
0x2380   :  { %2785 = vmatpush3.msra.mxu1 %v3292_v36  ;;  %v1959_v36 = vpop.permute.xlu1 %1958 }
0x2439   :  { %v1944_v50 = vpop.f32.mrf.mxu1 }
0x243a   :  { %v1948_v34 = vadd.f32 %v1944_v50, %v1265_v49 }
0x243b   :  { %v2766_v51 = vpop.f32.mrf.mxu1 }
0x243c   :  { %2926 = vtanh.f32 %v1948_v34  ;;  %v2443_v53 = vmul.f32 -1.442695, %v1948_v34 }
0x243e   :  { %2928 = vpow2.f32 %v2443_v53 }
0x2449   :  { %v2927_v52 = vpop.eup %2926 }
0x244a   :  { %1963 = vrot.lane.b32.xlu0 %v2927_v52, %s2952_s27 }
0x244b   :  { %v2929_v35 = vpop.eup %2928 }
0x244c   :  { %v1952_v54 = vadd.f32 1.0, %v2929_v35 }
0x244e   :  { %2930 = vrcp.f32 %v1952_v54 }
0x245b   :  { %v2931_v14 = vpop.eup %2930 }
0x245c   :  { %v1961_v56 = vmul.f32 %v2931_v14, %v1959_v36 }
0x24bc   :  { %v1964_v55 = vpop.permute.xlu0 %1963 }
0x24bd   :  { %v1966_v2 = vmul.f32 %v2931_v14, %v1964_v55 }
0x24bf   :  { %1968 = vrot.lane.b32.xlu0 %v1966_v2, %s2953_s28 }
0x2531   :  { %v1969_v19 = vpop.permute.xlu0 %1968 }
0x2532   :  { %v1971_v57 = vadd.f32 %v1969_v19, %v1961_v56  ;;  %v1275_v19 = vadd.f32 %v3372_v13, %v3324_v45 }
0x2534   :  { %2932 = vtanh.f32 %v1971_v57 }
0x2541   :  { %v2933_v58 = vpop.eup %2932 }
0x2542   :  { %1974 = vrot.lane.b32.xlu1 %v2933_v58, %s2952_s27 }
0x2546   :  { %1979 = vrot.lane.b32.xlu1 %v1971_v57, %s2954_s29 }
0x25b4   :  { %v1975_v60 = vpop.permute.xlu1 %1974 }
0x25b5   :  { %v1977_v61 = vmul.f32 %v2931_v14, %v1975_v60 }
0x25b7   :  { %1984 = vrot.lane.b32.xlu0 %v1977_v61, %s2953_s28 }
0x25b8   :  { %v1980_v62 = vpop.permute.xlu1 %1979 }
0x25b9   :  { %1982 = vst.msk [vmem:[#allocation5] sm:$0xff] %vm42_vm0, %v1980_v62 }
0x25c0   :  { %v2072_v63 = vld [vmem:[#allocation5] sm:$0xff] }
0x25c1   :  { %2074 = vrot.lane.b32.xlu1 %v2072_v63, %s2953_s28 }
0x2629   :  { %v1985_v0 = vpop.permute.xlu0 %1984 }
0x262a   :  { %1987 = vst.msk [vmem:[#allocation4] sm:$0xff] %vm42_vm0, %v1985_v0  ;;  %1988 = vst.msk [vmem:[#allocation3 + $0x28] sm:$0xff] %vm42_vm0, %v1985_v0 }
0x2631   :  { %v1990_v3 = vld [vmem:[#allocation4] sm:$0xff]  ;;  %v2226_v23 = vld [vmem:[#allocation3 + $0x28] sm:$0xff] }
0x2632   :  { %2776 = vmatmul.mubr.msk.f32.vlgmr.msra.gmra.mxu0 %vm42_vm0, %v1990_v3  ;;  %v2234_v24 = vmax.f32 %v2226_v23, 0.0 }
0x2633   :  { %2790 = vmatpush3.msra.mxu0 %v2240_v59  ;;  %2797 = vmatprep.mubr.msk.f32.mxu0 %vm42_vm0, %v2229_v5  ;;  %v2075_v49 = vpop.permute.xlu1 %2074 }
0x2634   :  { %2791 = vmatprep.subr.mxu0 %v2239_v4 }
0x2635   :  { %2792 = vmatpush3.msra.mxu0 %v2239_v4 }
0x2636   :  { %2793 = vmatprep.subr.mxu0 %v2238_v22 }
0x2637   :  { %2794 = vmatpush3.msra.mxu0 %v2238_v22 }
0x2638   :  { %2795 = vmatprep.subr.mxu0 %v2237_v6 }
0x2639   :  { %2796 = vmatpush3.msra.mxu0 %v2237_v6 }
0x263a   :  { %2798 = vmatmul.mubr.msk.f32.vlgmr.msra.gmra.mxu0 %vm42_vm0, %v2230_v10 }
0x263b   :  { %2800 = vmatprep.mubr.msk.f32.mxu0 %vm42_vm0, %v2231_v12 }
0x263e   :  { %2801 = vmatmul.mubr.msk.f32.gmra.mxu0 %vm42_vm0, %v2232_v18 }
0x263f   :  { %2803 = vmatprep.mubr.msk.f32.mxu0 %vm42_vm0, %v2233_v20 }
0x2642   :  { %2804 = vmatmul.mubr.msk.f32.gmra.mxu0 %vm42_vm0, %v2234_v24 }
0x26f2   :  { %v2060_v26 = vpop.f32.mrf.mxu0 }
0x26f3   :  { %v2064_v27 = vadd.f32 %v2060_v26, %v1270_v25 }
0x26f4   :  { %v2777_v28 = vpop.f32.mrf.mxu0 }
0x26f5   :  { %2934 = vtanh.f32 %v2064_v27  ;;  %v2445_v42 = vmul.f32 -1.442695, %v2064_v27 }
0x26f7   :  { %2936 = vpow2.f32 %v2445_v42 }
0x26fa   :  { %v2799_v29 = vpop.f32.mrf.mxu0 }
0x26fb   :  { %v2344_v30 = vadd.f32 %v2799_v29, %v3473_v7 }
0x26fc   :  { %v2338_v31 = vpop.f32.mrf.mxu0 }
0x26fd   :  { %2378 = vst [vmem:[%s3535_s6 + $0x8] sm:$0xff] %v2344_v30  ;;  %v2339_v32 = vadd.f32 %v3473_v7, %v2338_v31 }
0x26fe   :  { %v2802_v37 = vpop.f32.mrf.mxu0 }
0x26ff   :  { %2377 = vst [vmem:[%s3535_s6] sm:$0xff] %v2339_v32  ;;  %v2354_v11 = vadd.f32 %v2802_v37, %v3473_v7 }
0x2700   :  { %v2348_v33 = vpop.f32.mrf.mxu0 }
0x2701   :  { %2380 = vst [vmem:[%s3535_s6 + $0x18] sm:$0xff] %v2354_v11  ;;  %v2349_v16 = vadd.f32 %v3473_v7, %v2348_v33 }
0x2702   :  { %v2935_v38 = vpop.eup %2934  ;;  %v2805_v39 = vpop.f32.mrf.mxu0 }
0x2703   :  { %2379 = vst [vmem:[%s3535_s6 + $0x10] sm:$0xff] %v2349_v16  ;;  %v2364_v21 = vadd.f32 %v2805_v39, %v3473_v7  ;;  %2079 = vrot.lane.b32.xlu0 %v2935_v38, %s2952_s27 }
0x2704   :  { %v2358_v40 = vpop.f32.mrf.mxu0  ;;  %v2937_v43 = vpop.eup %2936 }
0x2705   :  { %2382 = vst [vmem:[%s3535_s6 + $0x28] sm:$0xff] %v2364_v21  ;;  %v2359_v41 = vadd.f32 %v3473_v7, %v2358_v40  ;;  %v2068_v44 = vadd.f32 1.0, %v2937_v43 }
0x2707   :  { %2381 = vst [vmem:[%s3535_s6 + $0x20] sm:$0xff] %v2359_v41  ;;  %2938 = vrcp.f32 %v2068_v44 }
0x2714   :  { %v2939_v46 = vpop.eup %2938 }
0x2715   :  { %v2077_v50 = vmul.f32 %v2939_v46, %v2075_v49 }
0x2775   :  { %v2080_v47 = vpop.permute.xlu0 %2079 }
0x2776   :  { %v2082_v48 = vmul.f32 %v2939_v46, %v2080_v47 }
0x2778   :  { %2084 = vrot.lane.b32.xlu0 %v2082_v48, %s2953_s28 }
0x27ea   :  { %v2085_v34 = vpop.permute.xlu0 %2084 }
0x27eb   :  { %v2087_v51 = vadd.f32 %v2085_v34, %v2077_v50 }
0x27ed   :  { %2940 = vtanh.f32 %v2087_v51 }
0x27fa   :  { %v2941_v52 = vpop.eup %2940 }
0x27fb   :  { %2090 = vrot.lane.b32.xlu1 %v2941_v52, %s2952_s27 }
0x27ff   :  { %2095 = vrot.lane.b32.xlu1 %v2087_v51, %s2954_s29 }
0x286d   :  { %v2091_v53 = vpop.permute.xlu1 %2090 }
0x286e   :  { %v2093_v35 = vmul.f32 %v2939_v46, %v2091_v53 }
0x2870   :  { %2100 = vrot.lane.b32.xlu0 %v2093_v35, %s2953_s28 }
0x2871   :  { %v2096_v54 = vpop.permute.xlu1 %2095 }
0x2872   :  { %2098 = vst.msk [vmem:[#allocation5] sm:$0xff] %vm42_vm0, %v2096_v54 }
0x2879   :  { %v2188_v14 = vld [vmem:[#allocation5] sm:$0xff] }
0x287a   :  { %2190 = vrot.lane.b32.xlu1 %v2188_v14, %s2953_s28 }
0x28e2   :  { %v2101_v55 = vpop.permute.xlu0 %2100 }
0x28e3   :  { %2103 = vst.msk [vmem:[#allocation4] sm:$0xff] %vm42_vm0, %v2101_v55  ;;  %2104 = vst.msk [vmem:[#allocation3 + $0x30] sm:$0xff] %vm42_vm0, %v2101_v55 }
0x28ea   :  { %v2106_v2 = vld [vmem:[#allocation4] sm:$0xff]  ;;  %v2227_v36 = vld [vmem:[#allocation3 + $0x30] sm:$0xff] }
0x28eb   :  { %2787 = vmatmul.mubr.msk.f32.vlgmr.msra.gmra.mxu1 %vm42_vm0, %v2106_v2  ;;  %v2235_v56 = vmax.f32 %v2227_v36, 0.0 }
0x28ec   :  { %v2191_v4 = vpop.permute.xlu1 %2190 }
0x28ed   :  { %2806 = vmatprep.mubr.msk.f32.mxu0 %vm42_vm0, %v2235_v56 }
0x29ab   :  { %v2176_v57 = vpop.f32.mrf.mxu1 }
0x29ac   :  { %v2180_v58 = vadd.f32 %v2176_v57, %v1275_v19 }
0x29ad   :  { %v2788_v59 = vpop.f32.mrf.mxu1 }
0x29ae   :  { %2942 = vtanh.f32 %v2180_v58  ;;  %v2447_v61 = vmul.f32 -1.442695, %v2180_v58 }
0x29b0   :  { %2944 = vpow2.f32 %v2447_v61 }
0x29bb   :  { %v2943_v60 = vpop.eup %2942 }
0x29bc   :  { %2195 = vrot.lane.b32.xlu0 %v2943_v60, %s2952_s27 }
0x29bd   :  { %v2945_v62 = vpop.eup %2944 }
0x29be   :  { %v2184_v63 = vadd.f32 1.0, %v2945_v62 }
0x29c0   :  { %2946 = vrcp.f32 %v2184_v63 }
0x29cd   :  { %v2947_v0 = vpop.eup %2946 }
0x29ce   :  { %v2193_v5 = vmul.f32 %v2947_v0, %v2191_v4 }
0x2a2e   :  { %v2196_v1 = vpop.permute.xlu0 %2195 }
0x2a2f   :  { %v2198_v3 = vmul.f32 %v2947_v0, %v2196_v1 }
0x2a31   :  { %2200 = vrot.lane.b32.xlu0 %v2198_v3, %s2953_s28 }
0x2aa3   :  { %v2201_v45 = vpop.permute.xlu0 %2200 }
0x2aa4   :  { %v2203_v13 = vadd.f32 %v2201_v45, %v2193_v5 }
0x2aa6   :  { %2948 = vtanh.f32 %v2203_v13 }
0x2ab3   :  { %v2949_v22 = vpop.eup %2948 }
0x2ab4   :  { %2206 = vrot.lane.b32.xlu1 %v2949_v22, %s2952_s27 }
0x2ab8   :  { %2211 = vrot.lane.b32.xlu1 %v2203_v13, %s2954_s29 }
0x2b26   :  { %v2207_v6 = vpop.permute.xlu1 %2206 }
0x2b27   :  { %v2209_v8 = vmul.f32 %v2947_v0, %v2207_v6 }
0x2b29   :  { %2216 = vrot.lane.b32.xlu0 %v2209_v8, %s2953_s28 }
0x2b2a   :  { %v2212_v9 = vpop.permute.xlu1 %2211 }
0x2b2b   :  { %2214 = vst.msk [vmem:[#allocation5] sm:$0xff] %vm42_vm0, %v2212_v9 }
0x2b9b   :  { %v2217_v10 = vpop.permute.xlu0 %2216 }
0x2b9c   :  { %2219 = vst.msk [vmem:[#allocation4] sm:$0xff] %vm42_vm0, %v2217_v10  ;;  %2220 = vst.msk [vmem:[#allocation3 + $0x38] sm:$0xff] %vm42_vm0, %v2217_v10 }
0x2ba3   :  { %v2228_v12 = vld [vmem:[#allocation3 + $0x38] sm:$0xff] }
0x2ba4   :  { %v2236_v15 = vmax.f32 %v2228_v12, 0.0 }
0x2ba6   :  { %2807 = vmatmul.mubr.msk.f32.gmra.mxu0 %vm42_vm0, %v2236_v15 }
0x2c66   :  { %v2808_v17 = vpop.f32.mrf.mxu0 }
0x2c67   :  { %v2374_v18 = vadd.f32 %v2808_v17, %v3473_v7 }
0x2c68   :  { %v2368_v20 = vpop.f32.mrf.mxu0 }
0x2c69   :  { %2384 = vst [vmem:[%s3535_s6 + $0x38] sm:$0xff] %v2374_v18  ;;  %v2369_v23 = vadd.f32 %v3473_v7, %v2368_v20 }
0x2c6b   :  { %2383 = vst [vmem:[%s3535_s6 + $0x30] sm:$0xff] %v2369_v23 }

</bundles_post_ra>
